<compile_context>
chip_gen: v7x
topology: tpu7x:2x2x1
jax: 0.10.0
libtpu: 0.0.40
codegen_flags: <defaults>
</compile_context>

<pallas_src>
import functools
import jax
import jax.numpy as jnp
from jax.experimental import pallas as pl
from jax.experimental.pallas import tpu as pltpu

# ---------------- model hyper-params (small, consistent with module) -------------
VOCAB = 20          # source_size
EMBED = 16          # embed_size
HIDDEN = 32         # hidden_size
NUM_LAYERS = 1      # args.num_layers
BIDIRECTIONAL = True
B = 2               # batch
T = 8               # max sequence length


# =========================== fused encoder kernel ================================
def _encoder_kernel(gxc_ref, mc_ref, whh_ref, wh_ref, bwh_ref,
                    out_ref, feat_ref, hx_ref, cx_ref,
                    *, seq_len, batch, hidden, ndir):
    """Whole (bi)directional-LSTM encoder forward in one invocation.

    gxc_ref : (T, B, 4*ndir*H) f32  precomputed x-projection + bias.
              Column layout is gate-major [i | f | g | o], each gate block has
              the forward columns first then backward; for loop step s the
              forward columns come from time s, the backward from time T-1-s.
    mc_ref  : (T, B, ndir*H) f32    validity mask (1/0) matching the state layout.
    whh_ref : (ndir*H, 4*ndir*H) bf16  block-diagonal recurrent weights (transposed).
    wh_ref  : (H, H) bf16  W_h^T;  bwh_ref: (1, H) f32 bias.
    out_ref : (T, B, H)  encoder_outputs (fwd+bwd summed, zero at padding)
    feat_ref: (T, B, H)  encoder_features = out @ W_h^T + b
    hx_ref/cx_ref: (B, H) final states summed over directions.
    """
    Tn, Bn, H = seq_len, batch, hidden
    DH = ndir * H

    whh = whh_ref[...]                                   # (DH, 4DH) bf16

    h = jnp.zeros((Bn, DH), jnp.float32)                 # [h_f | h_b]
    c = jnp.zeros((Bn, DH), jnp.float32)
    rows_f = [None] * Tn
    rows_b = [None] * Tn

    # fully unrolled time loop (T small & static); all indices static
    for s in range(Tn):
        gx = gxc_ref[s]                                  # (B, 4DH) f32, bias folded in
        m = mc_ref[s]                                    # (B, DH)  f32 validity mask

        # single fused MXU op per step for both directions (bf16 in, f32 acc)
        rec = jnp.dot(h.astype(jnp.bfloat16), whh,
                      preferred_element_type=jnp.float32)        # (B, 4DH)
        gates = gx + rec

        # full-width activations (one sigmoid / one tanh pass over all gates)
        sig = jax.nn.sigmoid(gates)
        tnh = jnp.tanh(gates)
        i_g = sig[:, 0 * DH:1 * DH]
        f_g = sig[:, 1 * DH:2 * DH]
        g_g = tnh[:, 2 * DH:3 * DH]
        o_g = sig[:, 3 * DH:4 * DH]

        c_new = f_g * c + i_g * g_g
        h_new = o_g * jnp.tanh(c_new)

        one_minus_m = 1.0 - m
        hm = m * h_new                                   # masked rows (0 at padding)
        h = hm + one_minus_m * h                         # freeze state at padded steps
        c = m * c_new + one_minus_m * c

        rows_f[s] = hm[:, 0:H]                           # forward output at time s
        if ndir == 2:
            rows_b[Tn - 1 - s] = hm[:, H:2 * H]          # backward output at time T-1-s

    # ---------------- epilogue: sum dirs, W_h projection, single dense writes -----
    wh = wh_ref[...]                                     # (H, H) bf16
    bwh = bwh_ref[...]                                   # (1, H) f32
    outs, feats = [], []
    for t in range(Tn):
        row = rows_f[t] + rows_b[t] if ndir == 2 else rows_f[t]      # (B, H)
        outs.append(row)
        feats.append(jnp.dot(row.astype(jnp.bfloat16), wh,
                             preferred_element_type=jnp.float32) + bwh)

    out_ref[...] = jnp.stack(outs, axis=0)               # one dense (T, B, H) store
    feat_ref[...] = jnp.stack(feats, axis=0)

    if ndir == 2:
        hx_ref[...] = h[:, 0:H] + h[:, H:2 * H]
        cx_ref[...] = c[:, 0:H] + c[:, H:2 * H]
    else:
        hx_ref[...] = h
        cx_ref[...] = c


# ============================ Encoder forward =====================================
def encoder_forward(sentences, params, opts):
    """sentences: (B, T) int32 token ids, 0 == padding (sorted by descending length,
    as required by pack_padded_sequence(enforce_sorted=True))."""
    b, t = sentences.shape
    H = HIDDEN
    bidir = bool(opts["bidirectional"])
    ndir = 2 if bidir else 1
    DH = ndir * H

    lengths = jnp.sum((sentences != 0).astype(jnp.int32), axis=-1)          # (B,)

    # TODO(synk): nn.Dropout(p=0.2) on embeddings is identity in eval mode; training-mode RNG dropout not reproduced.

    # ---- fold embedding into the input projection (weights static per call) -----
    toks_tb = jnp.transpose(sentences, (1, 0))                              # (T, B), seq-first

    def dir_gx(w_ih, b_ih, b_hh):
        G = jnp.dot(params["embed_w"], w_ih.T)                              # (VOCAB, 4H)
        return jnp.take(G, toks_tb, axis=0) + (b_ih + b_hh)                 # (T, B, 4H)

    gx_f = dir_gx(params["w_ih_f"], params["b_ih_f"], params["b_hh_f"])
    if bidir:
        gx_b = dir_gx(params["w_ih_b"], params["b_ih_b"], params["b_hh_b"])[::-1]  # time-reversed
        # gate-major interleave: [i_f,i_b | f_f,f_b | g_f,g_b | o_f,o_b]
        gxc = jnp.stack([gx_f.reshape(t, b, 4, H), gx_b.reshape(t, b, 4, H)],
                        axis=3).reshape(t, b, 4 * DH)
    else:
        gxc = gx_f
    gxc = gxc.astype(jnp.float32)

    # per-step validity masks matching the [fwd | bwd] state layout
    valid = (jnp.arange(t)[:, None] < lengths[None, :]).astype(jnp.float32)  # (T, B)
    mf = jnp.broadcast_to(valid[:, :, None], (t, b, H))
    if bidir:
        mb = jnp.broadcast_to(valid[::-1][:, :, None], (t, b, H))
        mc = jnp.concatenate([mf, mb], axis=-1)                              # (T, B, 2H)
    else:
        mc = mf
    mc = mc.astype(jnp.float32)

    # block-diagonal recurrent weights in gate-major column order (bf16 MXU inputs)
    whh_f_t = params["w_hh_f"].T                                             # (H, 4H)
    if bidir:
        whh_b_t = params["w_hh_b"].T
        z = jnp.zeros((H, 4, 1, H), jnp.float32)
        top = jnp.concatenate([whh_f_t.reshape(H, 4, 1, H), z], axis=2)      # rows: h_f
        bot = jnp.concatenate([z, whh_b_t.reshape(H, 4, 1, H)], axis=2)      # rows: h_b
        whh_blk = jnp.concatenate([top, bot], axis=0).reshape(DH, 4 * DH)
    else:
        whh_blk = whh_f_t
    whh_blk = whh_blk.astype(jnp.bfloat16)

    wh_t = params["W_h"].T.astype(jnp.bfloat16)                              # (H, H)
    bwh = params["b_W_h"].reshape(1, H).astype(jnp.float32)

    kernel = functools.partial(_encoder_kernel, seq_len=t, batch=b, hidden=H,
                               ndir=ndir)

    out3d, feat3d, hx, cx = pl.pallas_call(
        kernel,
        out_shape=(jax.ShapeDtypeStruct((t, b, H), jnp.float32),
                   jax.ShapeDtypeStruct((t, b, H), jnp.float32),
                   jax.ShapeDtypeStruct((b, H), jnp.float32),
                   jax.ShapeDtypeStruct((b, H), jnp.float32)),
        grid_spec=pltpu.PrefetchScalarGridSpec(
            num_scalar_prefetch=0,
            grid=(1,),
            in_specs=[
                pl.BlockSpec((t, b, 4 * DH), lambda i: (0, 0, 0)),   # gxc
                pl.BlockSpec((t, b, DH), lambda i: (0, 0, 0)),       # masks
                pl.BlockSpec((DH, 4 * DH), lambda i: (0, 0)),        # block-diag Whh^T (bf16)
                pl.BlockSpec((H, H), lambda i: (0, 0)),              # W_h^T (bf16)
                pl.BlockSpec((1, H), lambda i: (0, 0)),              # b_W_h
            ],
            out_specs=[
                pl.BlockSpec((t, b, H), lambda i: (0, 0, 0)),        # encoder_outputs
                pl.BlockSpec((t, b, H), lambda i: (0, 0, 0)),        # encoder_features
                pl.BlockSpec((b, H), lambda i: (0, 0)),              # h_n (summed dirs)
                pl.BlockSpec((b, H), lambda i: (0, 0)),              # c_n (summed dirs)
            ],
        ),
        compiler_params=pltpu.CompilerParams(
            dimension_semantics=("arbitrary",)),
    )(gxc, mc, whh_blk, wh_t, bwh)

    encoder_outputs = out3d                    # (T, B, H), seq-first like pad_packed_sequence
    encoder_features = feat3d
    hx = hx.reshape(b, -1)                     # num_layers == 1
    cx = cx.reshape(b, -1)
    return encoder_outputs, encoder_features, hx, cx


# ============================ parameter init ======================================
def init_params(key):
    ks = jax.random.split(key, 12)
    H4 = 4 * HIDDEN
    sc = 0.1
    embed_w = sc * jax.random.normal(ks[0], (VOCAB, EMBED), jnp.float32)
    embed_w = embed_w.at[0].set(0.0)  # padding_idx=0
    p = dict(
        embed_w=embed_w,
        w_ih_f=sc * jax.random.normal(ks[1], (H4, EMBED), jnp.float32),
        w_hh_f=sc * jax.random.normal(ks[2], (H4, HIDDEN), jnp.float32),
        b_ih_f=sc * jax.random.normal(ks[3], (H4,), jnp.float32),
        b_hh_f=sc * jax.random.normal(ks[4], (H4,), jnp.float32),
        w_ih_b=sc * jax.random.normal(ks[5], (H4, EMBED), jnp.float32),
        w_hh_b=sc * jax.random.normal(ks[6], (H4, HIDDEN), jnp.float32),
        b_ih_b=sc * jax.random.normal(ks[7], (H4,), jnp.float32),
        b_hh_b=sc * jax.random.normal(ks[8], (H4,), jnp.float32),
        W_h=sc * jax.random.normal(ks[9], (HIDDEN, HIDDEN), jnp.float32),
        b_W_h=sc * jax.random.normal(ks[10], (HIDDEN,), jnp.float32),
    )
    return p


if __name__ == "__main__":
    key = jax.random.PRNGKey(0)
    params = init_params(key)

    # sentences: (B, T) ids, 0 = pad; lengths sorted descending (enforce_sorted)
    tok_key = jax.random.fold_in(key, 123)
    toks = jax.random.randint(tok_key, (B, T), 1, VOCAB, dtype=jnp.int32)
    lengths = [T, 5]
    mask = jnp.arange(T)[None, :] < jnp.array(lengths)[:, None]
    sentences = jnp.where(mask, toks, 0)

    opts = {"bidirectional": BIDIRECTIONAL}
    enc_out, enc_feat, hx, cx = encoder_forward(sentences, params, opts)
    jax.block_until_ready((enc_out, enc_feat, hx, cx))

    assert enc_out.shape == (T, B, HIDDEN)
    assert enc_feat.shape == (T, B, HIDDEN)
    assert hx.shape == (B, HIDDEN * NUM_LAYERS)
    assert cx.shape == (B, HIDDEN * NUM_LAYERS)
    print("KERNEL_OK")
</pallas_src>

<mosaic_0001>
module attributes {stable_mosaic.version = 11 : i64} {
  func.func @_encoder_kernel(%arg0: i32, %arg1: memref<8x2x256xf32, #tpu.memory_space<vmem>>, %arg2: memref<8x2x64xf32, #tpu.memory_space<vmem>>, %arg3: memref<64x256xbf16, #tpu.memory_space<vmem>>, %arg4: memref<32x32xbf16, #tpu.memory_space<vmem>>, %arg5: memref<1x32xf32, #tpu.memory_space<vmem>>, %arg6: memref<8x2x32xf32, #tpu.memory_space<vmem>>, %arg7: memref<8x2x32xf32, #tpu.memory_space<vmem>>, %arg8: memref<2x32xf32, #tpu.memory_space<vmem>>, %arg9: memref<2x32xf32, #tpu.memory_space<vmem>>) attributes {dimension_semantics = [#tpu.dimension_semantics<arbitrary>], iteration_bounds = array<i64: 1>, scalar_prefetch = 0 : i64, scratch_operands = 0 : i64, tpu.core_type = #tpu.core_type<tc>, window_params = [{pipeline_mode = #tpu.pipeline_mode<synchronous>, transform_indices = @transform_0, window_bounds = array<i64: 8, 2, 256>}, {pipeline_mode = #tpu.pipeline_mode<synchronous>, transform_indices = @transform_1, window_bounds = array<i64: 8, 2, 64>}, {pipeline_mode = #tpu.pipeline_mode<synchronous>, transform_indices = @transform_2, window_bounds = array<i64: 64, 256>}, {pipeline_mode = #tpu.pipeline_mode<synchronous>, transform_indices = @transform_3, window_bounds = array<i64: 32, 32>}, {pipeline_mode = #tpu.pipeline_mode<synchronous>, transform_indices = @transform_4, window_bounds = array<i64: 1, 32>}, {pipeline_mode = #tpu.pipeline_mode<synchronous>, transform_indices = @transform_5, window_bounds = array<i64: 8, 2, 32>}, {pipeline_mode = #tpu.pipeline_mode<synchronous>, transform_indices = @transform_6, window_bounds = array<i64: 8, 2, 32>}, {pipeline_mode = #tpu.pipeline_mode<synchronous>, transform_indices = @transform_7, window_bounds = array<i64: 2, 32>}, {pipeline_mode = #tpu.pipeline_mode<synchronous>, transform_indices = @transform_8, window_bounds = array<i64: 2, 32>}]} {
    %c0 = arith.constant 0 : index
    %c0_0 = arith.constant 0 : index
    %0 = vector.load %arg3[%c0, %c0_0] : memref<64x256xbf16, #tpu.memory_space<vmem>>, vector<64x256xbf16>
    %cst = arith.constant 0.000000e+00 : f32
    %1 = vector.broadcast %cst : f32 to vector<2x64xf32>
    %cst_1 = arith.constant 0.000000e+00 : f32
    %2 = vector.broadcast %cst_1 : f32 to vector<2x64xf32>
    %c0_2 = arith.constant 0 : index
    %c0_3 = arith.constant 0 : index
    %c0_4 = arith.constant 0 : index
    %3 = vector.load %arg1[%c0_2, %c0_3, %c0_4] : memref<8x2x256xf32, #tpu.memory_space<vmem>>, vector<1x2x256xf32>
    %4 = vector.shape_cast %3 : vector<1x2x256xf32> to vector<2x256xf32>
    %c0_5 = arith.constant 0 : index
    %c0_6 = arith.constant 0 : index
    %c0_7 = arith.constant 0 : index
    %5 = vector.load %arg2[%c0_5, %c0_6, %c0_7] : memref<8x2x64xf32, #tpu.memory_space<vmem>>, vector<1x2x64xf32>
    %6 = vector.shape_cast %5 : vector<1x2x64xf32> to vector<2x64xf32>
    %7 = arith.truncf %1 : vector<2x64xf32> to vector<2x64xbf16>
    %cst_8 = arith.constant dense<0.000000e+00> : vector<2x256xf32>
    %8 = tpu.matmul %7, %0, %cst_8 {dimension_numbers = #tpu.dot_dimension_numbers<[1], [0], [0], [1], [0, 0, 1, 1], [], []>} : vector<2x64xbf16>, vector<64x256xbf16>, vector<2x256xf32> -> vector<2x256xf32>
    %9 = arith.addf %4, %8 : vector<2x256xf32>
    %10 = arith.negf %9 : vector<2x256xf32>
    %11 = math.exp %10 : vector<2x256xf32>
    %cst_9 = arith.constant 1.000000e+00 : f32
    %12 = vector.broadcast %cst_9 : f32 to vector<2x256xf32>
    %13 = arith.addf %12, %11 : vector<2x256xf32>
    %14 = arith.divf %12, %13 : vector<2x256xf32>
    %15 = math.tanh %9 : vector<2x256xf32>
    %16 = vector.extract_strided_slice %14 {offsets = [0, 0], sizes = [2, 64], strides = [1, 1]} : vector<2x256xf32> to vector<2x64xf32>
    %17 = vector.extract_strided_slice %14 {offsets = [0, 64], sizes = [2, 64], strides = [1, 1]} : vector<2x256xf32> to vector<2x64xf32>
    %18 = vector.extract_strided_slice %15 {offsets = [0, 128], sizes = [2, 64], strides = [1, 1]} : vector<2x256xf32> to vector<2x64xf32>
    %19 = vector.extract_strided_slice %14 {offsets = [0, 192], sizes = [2, 64], strides = [1, 1]} : vector<2x256xf32> to vector<2x64xf32>
    %20 = arith.mulf %17, %2 : vector<2x64xf32>
    %21 = arith.mulf %16, %18 : vector<2x64xf32>
    %22 = arith.addf %20, %21 : vector<2x64xf32>
    %23 = math.tanh %22 : vector<2x64xf32>
    %24 = arith.mulf %19, %23 : vector<2x64xf32>
    %cst_10 = arith.constant 1.000000e+00 : f32
    %25 = vector.broadcast %cst_10 : f32 to vector<2x64xf32>
    %26 = arith.subf %25, %6 : vector<2x64xf32>
    %27 = arith.mulf %6, %24 : vector<2x64xf32>
    %28 = arith.mulf %26, %1 : vector<2x64xf32>
    %29 = arith.addf %27, %28 : vector<2x64xf32>
    %30 = arith.mulf %6, %22 : vector<2x64xf32>
    %31 = arith.mulf %26, %2 : vector<2x64xf32>
    %32 = arith.addf %30, %31 : vector<2x64xf32>
    %33 = vector.extract_strided_slice %27 {offsets = [0, 0], sizes = [2, 32], strides = [1, 1]} : vector<2x64xf32> to vector<2x32xf32>
    %34 = vector.extract_strided_slice %27 {offsets = [0, 32], sizes = [2, 32], strides = [1, 1]} : vector<2x64xf32> to vector<2x32xf32>
    %c1 = arith.constant 1 : index
    %c0_11 = arith.constant 0 : index
    %c0_12 = arith.constant 0 : index
    %35 = vector.load %arg1[%c1, %c0_11, %c0_12] : memref<8x2x256xf32, #tpu.memory_space<vmem>>, vector<1x2x256xf32>
    %36 = vector.shape_cast %35 : vector<1x2x256xf32> to vector<2x256xf32>
    %c1_13 = arith.constant 1 : index
    %c0_14 = arith.constant 0 : index
    %c0_15 = arith.constant 0 : index
    %37 = vector.load %arg2[%c1_13, %c0_14, %c0_15] : memref<8x2x64xf32, #tpu.memory_space<vmem>>, vector<1x2x64xf32>
    %38 = vector.shape_cast %37 : vector<1x2x64xf32> to vector<2x64xf32>
    %39 = arith.truncf %29 : vector<2x64xf32> to vector<2x64xbf16>
    %cst_16 = arith.constant dense<0.000000e+00> : vector<2x256xf32>
    %40 = tpu.matmul %39, %0, %cst_16 {dimension_numbers = #tpu.dot_dimension_numbers<[1], [0], [0], [1], [0, 0, 1, 1], [], []>} : vector<2x64xbf16>, vector<64x256xbf16>, vector<2x256xf32> -> vector<2x256xf32>
    %41 = arith.addf %36, %40 : vector<2x256xf32>
    %42 = arith.negf %41 : vector<2x256xf32>
    %43 = math.exp %42 : vector<2x256xf32>
    %cst_17 = arith.constant 1.000000e+00 : f32
    %44 = vector.broadcast %cst_17 : f32 to vector<2x256xf32>
    %45 = arith.addf %44, %43 : vector<2x256xf32>
    %46 = arith.divf %44, %45 : vector<2x256xf32>
    %47 = math.tanh %41 : vector<2x256xf32>
    %48 = vector.extract_strided_slice %46 {offsets = [0, 0], sizes = [2, 64], strides = [1, 1]} : vector<2x256xf32> to vector<2x64xf32>
    %49 = vector.extract_strided_slice %46 {offsets = [0, 64], sizes = [2, 64], strides = [1, 1]} : vector<2x256xf32> to vector<2x64xf32>
    %50 = vector.extract_strided_slice %47 {offsets = [0, 128], sizes = [2, 64], strides = [1, 1]} : vector<2x256xf32> to vector<2x64xf32>
    %51 = vector.extract_strided_slice %46 {offsets = [0, 192], sizes = [2, 64], strides = [1, 1]} : vector<2x256xf32> to vector<2x64xf32>
    %52 = arith.mulf %49, %32 : vector<2x64xf32>
    %53 = arith.mulf %48, %50 : vector<2x64xf32>
    %54 = arith.addf %52, %53 : vector<2x64xf32>
    %55 = math.tanh %54 : vector<2x64xf32>
    %56 = arith.mulf %51, %55 : vector<2x64xf32>
    %cst_18 = arith.constant 1.000000e+00 : f32
    %57 = vector.broadcast %cst_18 : f32 to vector<2x64xf32>
    %58 = arith.subf %57, %38 : vector<2x64xf32>
    %59 = arith.mulf %38, %56 : vector<2x64xf32>
    %60 = arith.mulf %58, %29 : vector<2x64xf32>
    %61 = arith.addf %59, %60 : vector<2x64xf32>
    %62 = arith.mulf %38, %54 : vector<2x64xf32>
    %63 = arith.mulf %58, %32 : vector<2x64xf32>
    %64 = arith.addf %62, %63 : vector<2x64xf32>
    %65 = vector.extract_strided_slice %59 {offsets = [0, 0], sizes = [2, 32], strides = [1, 1]} : vector<2x64xf32> to vector<2x32xf32>
    %66 = vector.extract_strided_slice %59 {offsets = [0, 32], sizes = [2, 32], strides = [1, 1]} : vector<2x64xf32> to vector<2x32xf32>
    %c2 = arith.constant 2 : index
    %c0_19 = arith.constant 0 : index
    %c0_20 = arith.constant 0 : index
    %67 = vector.load %arg1[%c2, %c0_19, %c0_20] : memref<8x2x256xf32, #tpu.memory_space<vmem>>, vector<1x2x256xf32>
    %68 = vector.shape_cast %67 : vector<1x2x256xf32> to vector<2x256xf32>
    %c2_21 = arith.constant 2 : index
    %c0_22 = arith.constant 0 : index
    %c0_23 = arith.constant 0 : index
    %69 = vector.load %arg2[%c2_21, %c0_22, %c0_23] : memref<8x2x64xf32, #tpu.memory_space<vmem>>, vector<1x2x64xf32>
    %70 = vector.shape_cast %69 : vector<1x2x64xf32> to vector<2x64xf32>
    %71 = arith.truncf %61 : vector<2x64xf32> to vector<2x64xbf16>
    %cst_24 = arith.constant dense<0.000000e+00> : vector<2x256xf32>
    %72 = tpu.matmul %71, %0, %cst_24 {dimension_numbers = #tpu.dot_dimension_numbers<[1], [0], [0], [1], [0, 0, 1, 1], [], []>} : vector<2x64xbf16>, vector<64x256xbf16>, vector<2x256xf32> -> vector<2x256xf32>
    %73 = arith.addf %68, %72 : vector<2x256xf32>
    %74 = arith.negf %73 : vector<2x256xf32>
    %75 = math.exp %74 : vector<2x256xf32>
    %cst_25 = arith.constant 1.000000e+00 : f32
    %76 = vector.broadcast %cst_25 : f32 to vector<2x256xf32>
    %77 = arith.addf %76, %75 : vector<2x256xf32>
    %78 = arith.divf %76, %77 : vector<2x256xf32>
    %79 = math.tanh %73 : vector<2x256xf32>
    %80 = vector.extract_strided_slice %78 {offsets = [0, 0], sizes = [2, 64], strides = [1, 1]} : vector<2x256xf32> to vector<2x64xf32>
    %81 = vector.extract_strided_slice %78 {offsets = [0, 64], sizes = [2, 64], strides = [1, 1]} : vector<2x256xf32> to vector<2x64xf32>
    %82 = vector.extract_strided_slice %79 {offsets = [0, 128], sizes = [2, 64], strides = [1, 1]} : vector<2x256xf32> to vector<2x64xf32>
    %83 = vector.extract_strided_slice %78 {offsets = [0, 192], sizes = [2, 64], strides = [1, 1]} : vector<2x256xf32> to vector<2x64xf32>
    %84 = arith.mulf %81, %64 : vector<2x64xf32>
    %85 = arith.mulf %80, %82 : vector<2x64xf32>
    %86 = arith.addf %84, %85 : vector<2x64xf32>
    %87 = math.tanh %86 : vector<2x64xf32>
    %88 = arith.mulf %83, %87 : vector<2x64xf32>
    %cst_26 = arith.constant 1.000000e+00 : f32
    %89 = vector.broadcast %cst_26 : f32 to vector<2x64xf32>
    %90 = arith.subf %89, %70 : vector<2x64xf32>
    %91 = arith.mulf %70, %88 : vector<2x64xf32>
    %92 = arith.mulf %90, %61 : vector<2x64xf32>
    %93 = arith.addf %91, %92 : vector<2x64xf32>
    %94 = arith.mulf %70, %86 : vector<2x64xf32>
    %95 = arith.mulf %90, %64 : vector<2x64xf32>
    %96 = arith.addf %94, %95 : vector<2x64xf32>
    %97 = vector.extract_strided_slice %91 {offsets = [0, 0], sizes = [2, 32], strides = [1, 1]} : vector<2x64xf32> to vector<2x32xf32>
    %98 = vector.extract_strided_slice %91 {offsets = [0, 32], sizes = [2, 32], strides = [1, 1]} : vector<2x64xf32> to vector<2x32xf32>
    %c3 = arith.constant 3 : index
    %c0_27 = arith.constant 0 : index
    %c0_28 = arith.constant 0 : index
    %99 = vector.load %arg1[%c3, %c0_27, %c0_28] : memref<8x2x256xf32, #tpu.memory_space<vmem>>, vector<1x2x256xf32>
    %100 = vector.shape_cast %99 : vector<1x2x256xf32> to vector<2x256xf32>
    %c3_29 = arith.constant 3 : index
    %c0_30 = arith.constant 0 : index
    %c0_31 = arith.constant 0 : index
    %101 = vector.load %arg2[%c3_29, %c0_30, %c0_31] : memref<8x2x64xf32, #tpu.memory_space<vmem>>, vector<1x2x64xf32>
    %102 = vector.shape_cast %101 : vector<1x2x64xf32> to vector<2x64xf32>
    %103 = arith.truncf %93 : vector<2x64xf32> to vector<2x64xbf16>
    %cst_32 = arith.constant dense<0.000000e+00> : vector<2x256xf32>
    %104 = tpu.matmul %103, %0, %cst_32 {dimension_numbers = #tpu.dot_dimension_numbers<[1], [0], [0], [1], [0, 0, 1, 1], [], []>} : vector<2x64xbf16>, vector<64x256xbf16>, vector<2x256xf32> -> vector<2x256xf32>
    %105 = arith.addf %100, %104 : vector<2x256xf32>
    %106 = arith.negf %105 : vector<2x256xf32>
    %107 = math.exp %106 : vector<2x256xf32>
    %cst_33 = arith.constant 1.000000e+00 : f32
    %108 = vector.broadcast %cst_33 : f32 to vector<2x256xf32>
    %109 = arith.addf %108, %107 : vector<2x256xf32>
    %110 = arith.divf %108, %109 : vector<2x256xf32>
    %111 = math.tanh %105 : vector<2x256xf32>
    %112 = vector.extract_strided_slice %110 {offsets = [0, 0], sizes = [2, 64], strides = [1, 1]} : vector<2x256xf32> to vector<2x64xf32>
    %113 = vector.extract_strided_slice %110 {offsets = [0, 64], sizes = [2, 64], strides = [1, 1]} : vector<2x256xf32> to vector<2x64xf32>
    %114 = vector.extract_strided_slice %111 {offsets = [0, 128], sizes = [2, 64], strides = [1, 1]} : vector<2x256xf32> to vector<2x64xf32>
    %115 = vector.extract_strided_slice %110 {offsets = [0, 192], sizes = [2, 64], strides = [1, 1]} : vector<2x256xf32> to vector<2x64xf32>
    %116 = arith.mulf %113, %96 : vector<2x64xf32>
    %117 = arith.mulf %112, %114 : vector<2x64xf32>
    %118 = arith.addf %116, %117 : vector<2x64xf32>
    %119 = math.tanh %118 : vector<2x64xf32>
    %120 = arith.mulf %115, %119 : vector<2x64xf32>
    %cst_34 = arith.constant 1.000000e+00 : f32
    %121 = vector.broadcast %cst_34 : f32 to vector<2x64xf32>
    %122 = arith.subf %121, %102 : vector<2x64xf32>
    %123 = arith.mulf %102, %120 : vector<2x64xf32>
    %124 = arith.mulf %122, %93 : vector<2x64xf32>
    %125 = arith.addf %123, %124 : vector<2x64xf32>
    %126 = arith.mulf %102, %118 : vector<2x64xf32>
    %127 = arith.mulf %122, %96 : vector<2x64xf32>
    %128 = arith.addf %126, %127 : vector<2x64xf32>
    %129 = vector.extract_strided_slice %123 {offsets = [0, 0], sizes = [2, 32], strides = [1, 1]} : vector<2x64xf32> to vector<2x32xf32>
    %130 = vector.extract_strided_slice %123 {offsets = [0, 32], sizes = [2, 32], strides = [1, 1]} : vector<2x64xf32> to vector<2x32xf32>
    %c4 = arith.constant 4 : index
    %c0_35 = arith.constant 0 : index
    %c0_36 = arith.constant 0 : index
    %131 = vector.load %arg1[%c4, %c0_35, %c0_36] : memref<8x2x256xf32, #tpu.memory_space<vmem>>, vector<1x2x256xf32>
    %132 = vector.shape_cast %131 : vector<1x2x256xf32> to vector<2x256xf32>
    %c4_37 = arith.constant 4 : index
    %c0_38 = arith.constant 0 : index
    %c0_39 = arith.constant 0 : index
    %133 = vector.load %arg2[%c4_37, %c0_38, %c0_39] : memref<8x2x64xf32, #tpu.memory_space<vmem>>, vector<1x2x64xf32>
    %134 = vector.shape_cast %133 : vector<1x2x64xf32> to vector<2x64xf32>
    %135 = arith.truncf %125 : vector<2x64xf32> to vector<2x64xbf16>
    %cst_40 = arith.constant dense<0.000000e+00> : vector<2x256xf32>
    %136 = tpu.matmul %135, %0, %cst_40 {dimension_numbers = #tpu.dot_dimension_numbers<[1], [0], [0], [1], [0, 0, 1, 1], [], []>} : vector<2x64xbf16>, vector<64x256xbf16>, vector<2x256xf32> -> vector<2x256xf32>
    %137 = arith.addf %132, %136 : vector<2x256xf32>
    %138 = arith.negf %137 : vector<2x256xf32>
    %139 = math.exp %138 : vector<2x256xf32>
    %cst_41 = arith.constant 1.000000e+00 : f32
    %140 = vector.broadcast %cst_41 : f32 to vector<2x256xf32>
    %141 = arith.addf %140, %139 : vector<2x256xf32>
    %142 = arith.divf %140, %141 : vector<2x256xf32>
    %143 = math.tanh %137 : vector<2x256xf32>
    %144 = vector.extract_strided_slice %142 {offsets = [0, 0], sizes = [2, 64], strides = [1, 1]} : vector<2x256xf32> to vector<2x64xf32>
    %145 = vector.extract_strided_slice %142 {offsets = [0, 64], sizes = [2, 64], strides = [1, 1]} : vector<2x256xf32> to vector<2x64xf32>
    %146 = vector.extract_strided_slice %143 {offsets = [0, 128], sizes = [2, 64], strides = [1, 1]} : vector<2x256xf32> to vector<2x64xf32>
    %147 = vector.extract_strided_slice %142 {offsets = [0, 192], sizes = [2, 64], strides = [1, 1]} : vector<2x256xf32> to vector<2x64xf32>
    %148 = arith.mulf %145, %128 : vector<2x64xf32>
    %149 = arith.mulf %144, %146 : vector<2x64xf32>
    %150 = arith.addf %148, %149 : vector<2x64xf32>
    %151 = math.tanh %150 : vector<2x64xf32>
    %152 = arith.mulf %147, %151 : vector<2x64xf32>
    %cst_42 = arith.constant 1.000000e+00 : f32
    %153 = vector.broadcast %cst_42 : f32 to vector<2x64xf32>
    %154 = arith.subf %153, %134 : vector<2x64xf32>
    %155 = arith.mulf %134, %152 : vector<2x64xf32>
    %156 = arith.mulf %154, %125 : vector<2x64xf32>
    %157 = arith.addf %155, %156 : vector<2x64xf32>
    %158 = arith.mulf %134, %150 : vector<2x64xf32>
    %159 = arith.mulf %154, %128 : vector<2x64xf32>
    %160 = arith.addf %158, %159 : vector<2x64xf32>
    %161 = vector.extract_strided_slice %155 {offsets = [0, 0], sizes = [2, 32], strides = [1, 1]} : vector<2x64xf32> to vector<2x32xf32>
    %162 = vector.extract_strided_slice %155 {offsets = [0, 32], sizes = [2, 32], strides = [1, 1]} : vector<2x64xf32> to vector<2x32xf32>
    %c5 = arith.constant 5 : index
    %c0_43 = arith.constant 0 : index
    %c0_44 = arith.constant 0 : index
    %163 = vector.load %arg1[%c5, %c0_43, %c0_44] : memref<8x2x256xf32, #tpu.memory_space<vmem>>, vector<1x2x256xf32>
    %164 = vector.shape_cast %163 : vector<1x2x256xf32> to vector<2x256xf32>
    %c5_45 = arith.constant 5 : index
    %c0_46 = arith.constant 0 : index
    %c0_47 = arith.constant 0 : index
    %165 = vector.load %arg2[%c5_45, %c0_46, %c0_47] : memref<8x2x64xf32, #tpu.memory_space<vmem>>, vector<1x2x64xf32>
    %166 = vector.shape_cast %165 : vector<1x2x64xf32> to vector<2x64xf32>
    %167 = arith.truncf %157 : vector<2x64xf32> to vector<2x64xbf16>
    %cst_48 = arith.constant dense<0.000000e+00> : vector<2x256xf32>
    %168 = tpu.matmul %167, %0, %cst_48 {dimension_numbers = #tpu.dot_dimension_numbers<[1], [0], [0], [1], [0, 0, 1, 1], [], []>} : vector<2x64xbf16>, vector<64x256xbf16>, vector<2x256xf32> -> vector<2x256xf32>
    %169 = arith.addf %164, %168 : vector<2x256xf32>
    %170 = arith.negf %169 : vector<2x256xf32>
    %171 = math.exp %170 : vector<2x256xf32>
    %cst_49 = arith.constant 1.000000e+00 : f32
    %172 = vector.broadcast %cst_49 : f32 to vector<2x256xf32>
    %173 = arith.addf %172, %171 : vector<2x256xf32>
    %174 = arith.divf %172, %173 : vector<2x256xf32>
    %175 = math.tanh %169 : vector<2x256xf32>
    %176 = vector.extract_strided_slice %174 {offsets = [0, 0], sizes = [2, 64], strides = [1, 1]} : vector<2x256xf32> to vector<2x64xf32>
    %177 = vector.extract_strided_slice %174 {offsets = [0, 64], sizes = [2, 64], strides = [1, 1]} : vector<2x256xf32> to vector<2x64xf32>
    %178 = vector.extract_strided_slice %175 {offsets = [0, 128], sizes = [2, 64], strides = [1, 1]} : vector<2x256xf32> to vector<2x64xf32>
    %179 = vector.extract_strided_slice %174 {offsets = [0, 192], sizes = [2, 64], strides = [1, 1]} : vector<2x256xf32> to vector<2x64xf32>
    %180 = arith.mulf %177, %160 : vector<2x64xf32>
    %181 = arith.mulf %176, %178 : vector<2x64xf32>
    %182 = arith.addf %180, %181 : vector<2x64xf32>
    %183 = math.tanh %182 : vector<2x64xf32>
    %184 = arith.mulf %179, %183 : vector<2x64xf32>
    %cst_50 = arith.constant 1.000000e+00 : f32
    %185 = vector.broadcast %cst_50 : f32 to vector<2x64xf32>
    %186 = arith.subf %185, %166 : vector<2x64xf32>
    %187 = arith.mulf %166, %184 : vector<2x64xf32>
    %188 = arith.mulf %186, %157 : vector<2x64xf32>
    %189 = arith.addf %187, %188 : vector<2x64xf32>
    %190 = arith.mulf %166, %182 : vector<2x64xf32>
    %191 = arith.mulf %186, %160 : vector<2x64xf32>
    %192 = arith.addf %190, %191 : vector<2x64xf32>
    %193 = vector.extract_strided_slice %187 {offsets = [0, 0], sizes = [2, 32], strides = [1, 1]} : vector<2x64xf32> to vector<2x32xf32>
    %194 = vector.extract_strided_slice %187 {offsets = [0, 32], sizes = [2, 32], strides = [1, 1]} : vector<2x64xf32> to vector<2x32xf32>
    %c6 = arith.constant 6 : index
    %c0_51 = arith.constant 0 : index
    %c0_52 = arith.constant 0 : index
    %195 = vector.load %arg1[%c6, %c0_51, %c0_52] : memref<8x2x256xf32, #tpu.memory_space<vmem>>, vector<1x2x256xf32>
    %196 = vector.shape_cast %195 : vector<1x2x256xf32> to vector<2x256xf32>
    %c6_53 = arith.constant 6 : index
    %c0_54 = arith.constant 0 : index
    %c0_55 = arith.constant 0 : index
    %197 = vector.load %arg2[%c6_53, %c0_54, %c0_55] : memref<8x2x64xf32, #tpu.memory_space<vmem>>, vector<1x2x64xf32>
    %198 = vector.shape_cast %197 : vector<1x2x64xf32> to vector<2x64xf32>
    %199 = arith.truncf %189 : vector<2x64xf32> to vector<2x64xbf16>
    %cst_56 = arith.constant dense<0.000000e+00> : vector<2x256xf32>
    %200 = tpu.matmul %199, %0, %cst_56 {dimension_numbers = #tpu.dot_dimension_numbers<[1], [0], [0], [1], [0, 0, 1, 1], [], []>} : vector<2x64xbf16>, vector<64x256xbf16>, vector<2x256xf32> -> vector<2x256xf32>
    %201 = arith.addf %196, %200 : vector<2x256xf32>
    %202 = arith.negf %201 : vector<2x256xf32>
    %203 = math.exp %202 : vector<2x256xf32>
    %cst_57 = arith.constant 1.000000e+00 : f32
    %204 = vector.broadcast %cst_57 : f32 to vector<2x256xf32>
    %205 = arith.addf %204, %203 : vector<2x256xf32>
    %206 = arith.divf %204, %205 : vector<2x256xf32>
    %207 = math.tanh %201 : vector<2x256xf32>
    %208 = vector.extract_strided_slice %206 {offsets = [0, 0], sizes = [2, 64], strides = [1, 1]} : vector<2x256xf32> to vector<2x64xf32>
    %209 = vector.extract_strided_slice %206 {offsets = [0, 64], sizes = [2, 64], strides = [1, 1]} : vector<2x256xf32> to vector<2x64xf32>
    %210 = vector.extract_strided_slice %207 {offsets = [0, 128], sizes = [2, 64], strides = [1, 1]} : vector<2x256xf32> to vector<2x64xf32>
    %211 = vector.extract_strided_slice %206 {offsets = [0, 192], sizes = [2, 64], strides = [1, 1]} : vector<2x256xf32> to vector<2x64xf32>
    %212 = arith.mulf %209, %192 : vector<2x64xf32>
    %213 = arith.mulf %208, %210 : vector<2x64xf32>
    %214 = arith.addf %212, %213 : vector<2x64xf32>
    %215 = math.tanh %214 : vector<2x64xf32>
    %216 = arith.mulf %211, %215 : vector<2x64xf32>
    %cst_58 = arith.constant 1.000000e+00 : f32
    %217 = vector.broadcast %cst_58 : f32 to vector<2x64xf32>
    %218 = arith.subf %217, %198 : vector<2x64xf32>
    %219 = arith.mulf %198, %216 : vector<2x64xf32>
    %220 = arith.mulf %218, %189 : vector<2x64xf32>
    %221 = arith.addf %219, %220 : vector<2x64xf32>
    %222 = arith.mulf %198, %214 : vector<2x64xf32>
    %223 = arith.mulf %218, %192 : vector<2x64xf32>
    %224 = arith.addf %222, %223 : vector<2x64xf32>
    %225 = vector.extract_strided_slice %219 {offsets = [0, 0], sizes = [2, 32], strides = [1, 1]} : vector<2x64xf32> to vector<2x32xf32>
    %226 = vector.extract_strided_slice %219 {offsets = [0, 32], sizes = [2, 32], strides = [1, 1]} : vector<2x64xf32> to vector<2x32xf32>
    %c7 = arith.constant 7 : index
    %c0_59 = arith.constant 0 : index
    %c0_60 = arith.constant 0 : index
    %227 = vector.load %arg1[%c7, %c0_59, %c0_60] : memref<8x2x256xf32, #tpu.memory_space<vmem>>, vector<1x2x256xf32>
    %228 = vector.shape_cast %227 : vector<1x2x256xf32> to vector<2x256xf32>
    %c7_61 = arith.constant 7 : index
    %c0_62 = arith.constant 0 : index
    %c0_63 = arith.constant 0 : index
    %229 = vector.load %arg2[%c7_61, %c0_62, %c0_63] : memref<8x2x64xf32, #tpu.memory_space<vmem>>, vector<1x2x64xf32>
    %230 = vector.shape_cast %229 : vector<1x2x64xf32> to vector<2x64xf32>
    %231 = arith.truncf %221 : vector<2x64xf32> to vector<2x64xbf16>
    %cst_64 = arith.constant dense<0.000000e+00> : vector<2x256xf32>
    %232 = tpu.matmul %231, %0, %cst_64 {dimension_numbers = #tpu.dot_dimension_numbers<[1], [0], [0], [1], [0, 0, 1, 1], [], []>} : vector<2x64xbf16>, vector<64x256xbf16>, vector<2x256xf32> -> vector<2x256xf32>
    %233 = arith.addf %228, %232 : vector<2x256xf32>
    %234 = arith.negf %233 : vector<2x256xf32>
    %235 = math.exp %234 : vector<2x256xf32>
    %cst_65 = arith.constant 1.000000e+00 : f32
    %236 = vector.broadcast %cst_65 : f32 to vector<2x256xf32>
    %237 = arith.addf %236, %235 : vector<2x256xf32>
    %238 = arith.divf %236, %237 : vector<2x256xf32>
    %239 = math.tanh %233 : vector<2x256xf32>
    %240 = vector.extract_strided_slice %238 {offsets = [0, 0], sizes = [2, 64], strides = [1, 1]} : vector<2x256xf32> to vector<2x64xf32>
    %241 = vector.extract_strided_slice %238 {offsets = [0, 64], sizes = [2, 64], strides = [1, 1]} : vector<2x256xf32> to vector<2x64xf32>
    %242 = vector.extract_strided_slice %239 {offsets = [0, 128], sizes = [2, 64], strides = [1, 1]} : vector<2x256xf32> to vector<2x64xf32>
    %243 = vector.extract_strided_slice %238 {offsets = [0, 192], sizes = [2, 64], strides = [1, 1]} : vector<2x256xf32> to vector<2x64xf32>
    %244 = arith.mulf %241, %224 : vector<2x64xf32>
    %245 = arith.mulf %240, %242 : vector<2x64xf32>
    %246 = arith.addf %244, %245 : vector<2x64xf32>
    %247 = math.tanh %246 : vector<2x64xf32>
    %248 = arith.mulf %243, %247 : vector<2x64xf32>
    %cst_66 = arith.constant 1.000000e+00 : f32
    %249 = vector.broadcast %cst_66 : f32 to vector<2x64xf32>
    %250 = arith.subf %249, %230 : vector<2x64xf32>
    %251 = arith.mulf %230, %248 : vector<2x64xf32>
    %252 = arith.mulf %250, %221 : vector<2x64xf32>
    %253 = arith.addf %251, %252 : vector<2x64xf32>
    %254 = arith.mulf %230, %246 : vector<2x64xf32>
    %255 = arith.mulf %250, %224 : vector<2x64xf32>
    %256 = arith.addf %254, %255 : vector<2x64xf32>
    %257 = vector.extract_strided_slice %251 {offsets = [0, 0], sizes = [2, 32], strides = [1, 1]} : vector<2x64xf32> to vector<2x32xf32>
    %258 = vector.extract_strided_slice %251 {offsets = [0, 32], sizes = [2, 32], strides = [1, 1]} : vector<2x64xf32> to vector<2x32xf32>
    %c0_67 = arith.constant 0 : index
    %c0_68 = arith.constant 0 : index
    %259 = vector.load %arg4[%c0_67, %c0_68] : memref<32x32xbf16, #tpu.memory_space<vmem>>, vector<32x32xbf16>
    %c0_69 = arith.constant 0 : index
    %c0_70 = arith.constant 0 : index
    %260 = vector.load %arg5[%c0_69, %c0_70] : memref<1x32xf32, #tpu.memory_space<vmem>>, vector<1x32xf32>
    %261 = arith.addf %33, %258 : vector<2x32xf32>
    %262 = arith.truncf %261 : vector<2x32xf32> to vector<2x32xbf16>
    %cst_71 = arith.constant dense<0.000000e+00> : vector<2x32xf32>
    %263 = tpu.matmul %262, %259, %cst_71 {dimension_numbers = #tpu.dot_dimension_numbers<[1], [0], [0], [1], [0, 0, 1, 1], [], []>} : vector<2x32xbf16>, vector<32x32xbf16>, vector<2x32xf32> -> vector<2x32xf32>
    %264 = vector.broadcast %260 : vector<1x32xf32> to vector<2x32xf32>
    %265 = arith.addf %263, %264 : vector<2x32xf32>
    %266 = arith.addf %65, %226 : vector<2x32xf32>
    %267 = arith.truncf %266 : vector<2x32xf32> to vector<2x32xbf16>
    %cst_72 = arith.constant dense<0.000000e+00> : vector<2x32xf32>
    %268 = tpu.matmul %267, %259, %cst_72 {dimension_numbers = #tpu.dot_dimension_numbers<[1], [0], [0], [1], [0, 0, 1, 1], [], []>} : vector<2x32xbf16>, vector<32x32xbf16>, vector<2x32xf32> -> vector<2x32xf32>
    %269 = vector.broadcast %260 : vector<1x32xf32> to vector<2x32xf32>
    %270 = arith.addf %268, %269 : vector<2x32xf32>
    %271 = arith.addf %97, %194 : vector<2x32xf32>
    %272 = arith.truncf %271 : vector<2x32xf32> to vector<2x32xbf16>
    %cst_73 = arith.constant dense<0.000000e+00> : vector<2x32xf32>
    %273 = tpu.matmul %272, %259, %cst_73 {dimension_numbers = #tpu.dot_dimension_numbers<[1], [0], [0], [1], [0, 0, 1, 1], [], []>} : vector<2x32xbf16>, vector<32x32xbf16>, vector<2x32xf32> -> vector<2x32xf32>
    %274 = vector.broadcast %260 : vector<1x32xf32> to vector<2x32xf32>
    %275 = arith.addf %273, %274 : vector<2x32xf32>
    %276 = arith.addf %129, %162 : vector<2x32xf32>
    %277 = arith.truncf %276 : vector<2x32xf32> to vector<2x32xbf16>
    %cst_74 = arith.constant dense<0.000000e+00> : vector<2x32xf32>
    %278 = tpu.matmul %277, %259, %cst_74 {dimension_numbers = #tpu.dot_dimension_numbers<[1], [0], [0], [1], [0, 0, 1, 1], [], []>} : vector<2x32xbf16>, vector<32x32xbf16>, vector<2x32xf32> -> vector<2x32xf32>
    %279 = vector.broadcast %260 : vector<1x32xf32> to vector<2x32xf32>
    %280 = arith.addf %278, %279 : vector<2x32xf32>
    %281 = arith.addf %161, %130 : vector<2x32xf32>
    %282 = arith.truncf %281 : vector<2x32xf32> to vector<2x32xbf16>
    %cst_75 = arith.constant dense<0.000000e+00> : vector<2x32xf32>
    %283 = tpu.matmul %282, %259, %cst_75 {dimension_numbers = #tpu.dot_dimension_numbers<[1], [0], [0], [1], [0, 0, 1, 1], [], []>} : vector<2x32xbf16>, vector<32x32xbf16>, vector<2x32xf32> -> vector<2x32xf32>
    %284 = vector.broadcast %260 : vector<1x32xf32> to vector<2x32xf32>
    %285 = arith.addf %283, %284 : vector<2x32xf32>
    %286 = arith.addf %193, %98 : vector<2x32xf32>
    %287 = arith.truncf %286 : vector<2x32xf32> to vector<2x32xbf16>
    %cst_76 = arith.constant dense<0.000000e+00> : vector<2x32xf32>
    %288 = tpu.matmul %287, %259, %cst_76 {dimension_numbers = #tpu.dot_dimension_numbers<[1], [0], [0], [1], [0, 0, 1, 1], [], []>} : vector<2x32xbf16>, vector<32x32xbf16>, vector<2x32xf32> -> vector<2x32xf32>
    %289 = vector.broadcast %260 : vector<1x32xf32> to vector<2x32xf32>
    %290 = arith.addf %288, %289 : vector<2x32xf32>
    %291 = arith.addf %225, %66 : vector<2x32xf32>
    %292 = arith.truncf %291 : vector<2x32xf32> to vector<2x32xbf16>
    %cst_77 = arith.constant dense<0.000000e+00> : vector<2x32xf32>
    %293 = tpu.matmul %292, %259, %cst_77 {dimension_numbers = #tpu.dot_dimension_numbers<[1], [0], [0], [1], [0, 0, 1, 1], [], []>} : vector<2x32xbf16>, vector<32x32xbf16>, vector<2x32xf32> -> vector<2x32xf32>
    %294 = vector.broadcast %260 : vector<1x32xf32> to vector<2x32xf32>
    %295 = arith.addf %293, %294 : vector<2x32xf32>
    %296 = arith.addf %257, %34 : vector<2x32xf32>
    %297 = arith.truncf %296 : vector<2x32xf32> to vector<2x32xbf16>
    %cst_78 = arith.constant dense<0.000000e+00> : vector<2x32xf32>
    %298 = tpu.matmul %297, %259, %cst_78 {dimension_numbers = #tpu.dot_dimension_numbers<[1], [0], [0], [1], [0, 0, 1, 1], [], []>} : vector<2x32xbf16>, vector<32x32xbf16>, vector<2x32xf32> -> vector<2x32xf32>
    %299 = vector.broadcast %260 : vector<1x32xf32> to vector<2x32xf32>
    %300 = arith.addf %298, %299 : vector<2x32xf32>
    %301 = vector.shape_cast %261 : vector<2x32xf32> to vector<1x2x32xf32>
    %302 = vector.shape_cast %266 : vector<2x32xf32> to vector<1x2x32xf32>
    %303 = vector.shape_cast %271 : vector<2x32xf32> to vector<1x2x32xf32>
    %304 = vector.shape_cast %276 : vector<2x32xf32> to vector<1x2x32xf32>
    %305 = vector.shape_cast %281 : vector<2x32xf32> to vector<1x2x32xf32>
    %306 = vector.shape_cast %286 : vector<2x32xf32> to vector<1x2x32xf32>
    %307 = vector.shape_cast %291 : vector<2x32xf32> to vector<1x2x32xf32>
    %308 = vector.shape_cast %296 : vector<2x32xf32> to vector<1x2x32xf32>
    %309 = tpu.concatenate %301, %302, %303, %304, %305, %306, %307, %308 in 0 : vector<1x2x32xf32>, vector<1x2x32xf32>, vector<1x2x32xf32>, vector<1x2x32xf32>, vector<1x2x32xf32>, vector<1x2x32xf32>, vector<1x2x32xf32>, vector<1x2x32xf32> -> vector<8x2x32xf32>
    %c0_79 = arith.constant 0 : index
    %c0_80 = arith.constant 0 : index
    %c0_81 = arith.constant 0 : index
    %310 = vector.load %arg6[%c0_79, %c0_80, %c0_81] : memref<8x2x32xf32, #tpu.memory_space<vmem>>, vector<8x2x32xf32>
    tpu.vector_store %arg6[%c0_79, %c0_80, %c0_81], %309 {strides = array<i32>} : memref<8x2x32xf32, #tpu.memory_space<vmem>>, vector<8x2x32xf32>,
    %311 = vector.shape_cast %265 : vector<2x32xf32> to vector<1x2x32xf32>
    %312 = vector.shape_cast %270 : vector<2x32xf32> to vector<1x2x32xf32>
    %313 = vector.shape_cast %275 : vector<2x32xf32> to vector<1x2x32xf32>
    %314 = vector.shape_cast %280 : vector<2x32xf32> to vector<1x2x32xf32>
    %315 = vector.shape_cast %285 : vector<2x32xf32> to vector<1x2x32xf32>
    %316 = vector.shape_cast %290 : vector<2x32xf32> to vector<1x2x32xf32>
    %317 = vector.shape_cast %295 : vector<2x32xf32> to vector<1x2x32xf32>
    %318 = vector.shape_cast %300 : vector<2x32xf32> to vector<1x2x32xf32>
    %319 = tpu.concatenate %311, %312, %313, %314, %315, %316, %317, %318 in 0 : vector<1x2x32xf32>, vector<1x2x32xf32>, vector<1x2x32xf32>, vector<1x2x32xf32>, vector<1x2x32xf32>, vector<1x2x32xf32>, vector<1x2x32xf32>, vector<1x2x32xf32> -> vector<8x2x32xf32>
    %c0_82 = arith.constant 0 : index
    %c0_83 = arith.constant 0 : index
    %c0_84 = arith.constant 0 : index
    %320 = vector.load %arg7[%c0_82, %c0_83, %c0_84] : memref<8x2x32xf32, #tpu.memory_space<vmem>>, vector<8x2x32xf32>
    tpu.vector_store %arg7[%c0_82, %c0_83, %c0_84], %319 {strides = array<i32>} : memref<8x2x32xf32, #tpu.memory_space<vmem>>, vector<8x2x32xf32>,
    %321 = vector.extract_strided_slice %253 {offsets = [0, 0], sizes = [2, 32], strides = [1, 1]} : vector<2x64xf32> to vector<2x32xf32>
    %322 = vector.extract_strided_slice %253 {offsets = [0, 32], sizes = [2, 32], strides = [1, 1]} : vector<2x64xf32> to vector<2x32xf32>
    %323 = arith.addf %321, %322 : vector<2x32xf32>
    %c0_85 = arith.constant 0 : index
    %c0_86 = arith.constant 0 : index
    %324 = vector.load %arg8[%c0_85, %c0_86] : memref<2x32xf32, #tpu.memory_space<vmem>>, vector<2x32xf32>
    tpu.vector_store %arg8[%c0_85, %c0_86], %323 {strides = array<i32>} : memref<2x32xf32, #tpu.memory_space<vmem>>, vector<2x32xf32>,
    %325 = vector.extract_strided_slice %256 {offsets = [0, 0], sizes = [2, 32], strides = [1, 1]} : vector<2x64xf32> to vector<2x32xf32>
    %326 = vector.extract_strided_slice %256 {offsets = [0, 32], sizes = [2, 32], strides = [1, 1]} : vector<2x64xf32> to vector<2x32xf32>
    %327 = arith.addf %325, %326 : vector<2x32xf32>
    %c0_87 = arith.constant 0 : index
    %c0_88 = arith.constant 0 : index
    %328 = vector.load %arg9[%c0_87, %c0_88] : memref<2x32xf32, #tpu.memory_space<vmem>>, vector<2x32xf32>
    tpu.vector_store %arg9[%c0_87, %c0_88], %327 {strides = array<i32>} : memref<2x32xf32, #tpu.memory_space<vmem>>, vector<2x32xf32>,
    return
  }
  func.func @transform_0(%arg0: i32) -> (i32, i32, i32) {
    %c0_i32 = arith.constant 0 : i32
    %c0_i32_0 = arith.constant 0 : i32
    %c0_i32_1 = arith.constant 0 : i32
    %c0_i32_2 = arith.constant 0 : i32
    return %c0_i32, %c0_i32_0, %c0_i32_1 : i32, i32, i32
  }
  func.func @transform_1(%arg0: i32) -> (i32, i32, i32) {
    %c0_i32 = arith.constant 0 : i32
    %c0_i32_0 = arith.constant 0 : i32
    %c0_i32_1 = arith.constant 0 : i32
    %c0_i32_2 = arith.constant 0 : i32
    return %c0_i32, %c0_i32_0, %c0_i32_1 : i32, i32, i32
  }
  func.func @transform_2(%arg0: i32) -> (i32, i32) {
    %c0_i32 = arith.constant 0 : i32
    %c0_i32_0 = arith.constant 0 : i32
    %c0_i32_1 = arith.constant 0 : i32
    return %c0_i32, %c0_i32_0 : i32, i32
  }
  func.func @transform_3(%arg0: i32) -> (i32, i32) {
    %c0_i32 = arith.constant 0 : i32
    %c0_i32_0 = arith.constant 0 : i32
    %c0_i32_1 = arith.constant 0 : i32
    return %c0_i32, %c0_i32_0 : i32, i32
  }
  func.func @transform_4(%arg0: i32) -> (i32, i32) {
    %c0_i32 = arith.constant 0 : i32
    %c0_i32_0 = arith.constant 0 : i32
    %c0_i32_1 = arith.constant 0 : i32
    return %c0_i32, %c0_i32_0 : i32, i32
  }
  func.func @transform_5(%arg0: i32) -> (i32, i32, i32) {
    %c0_i32 = arith.constant 0 : i32
    %c0_i32_0 = arith.constant 0 : i32
    %c0_i32_1 = arith.constant 0 : i32
    %c0_i32_2 = arith.constant 0 : i32
    return %c0_i32, %c0_i32_0, %c0_i32_1 : i32, i32, i32
  }
  func.func @transform_6(%arg0: i32) -> (i32, i32, i32) {
    %c0_i32 = arith.constant 0 : i32
    %c0_i32_0 = arith.constant 0 : i32
    %c0_i32_1 = arith.constant 0 : i32
    %c0_i32_2 = arith.constant 0 : i32
    return %c0_i32, %c0_i32_0, %c0_i32_1 : i32, i32, i32
  }
  func.func @transform_7(%arg0: i32) -> (i32, i32) {
    %c0_i32 = arith.constant 0 : i32
    %c0_i32_0 = arith.constant 0 : i32
    %c0_i32_1 = arith.constant 0 : i32
    return %c0_i32, %c0_i32_0 : i32, i32
  }
  func.func @transform_8(%arg0: i32) -> (i32, i32) {
    %c0_i32 = arith.constant 0 : i32
    %c0_i32_0 = arith.constant 0 : i32
    %c0_i32_1 = arith.constant 0 : i32
    return %c0_i32, %c0_i32_0 : i32, i32
  }
}

</mosaic_0001>

<bundles_post_ra>
// kernel: tpu_custom_call.1
= control target key start
LH: loop header
LB: loop body
LE: loop exit
PB: predicated region body
PF: predicated region fallthrough
CT: control target
= control target key end

     0   :  { %14 = vsyncpa [#allocation3], 0  ;;  %s2462_s0 = inlined_call_operand.hbm [shape: f32[8,2,256], index: 0, kind: input, shape index: {}]   ;;  %s2463_s1 = inlined_call_operand.hbm [shape: f32[8,2,64], index: 1, kind: input, shape index: {}]   ;;  %s2464_s2 = inlined_call_operand.hbm [shape: bf16[64,256], index: 2, kind: input, shape index: {}]   ;;  %s2465_s3 = inlined_call_operand.hbm [shape: bf16[32,32], index: 3, kind: input, shape index: {}]   ;;  %s2466_s4 = inlined_call_operand.vmem [shape: f32[1,32], index: 4, kind: input, shape index: {}]   ;;  %s2467_s5 = inlined_call_operand.hbm [shape: f32[8,2,32], index: 5, kind: output, shape index: {0}]   ;;  %s2468_s6 = inlined_call_operand.hbm [shape: f32[8,2,32], index: 6, kind: output, shape index: {1}]   ;;  %s2469_s7 = inlined_call_operand.hbm [shape: f32[2,32], index: 7, kind: output, shape index: {2}]   ;;  %s2470_s8 = inlined_call_operand.hbm [shape: f32[2,32], index: 8, kind: output, shape index: {3}]  }
   0x1   :  { %15 = vsyncpa [#allocation6], 0 }
   0x2   :  { %16 = vsyncpa [#allocation9], 0 }
   0x3   :  { %17 = vsyncpa [#allocation4], 0 }
   0x4   :  { %18 = vsyncpa [#allocation12], 0 }
   0x5   :  { %19 = vsyncpa [#allocation15], 0  ;;  %s1975_s27 = smov [#allocation5]   ;;  %s1787_s9 = scalar_lea.hbm %s2463_s1, 256 }
   0x6   :  { %s37_s28 = sshll.u32 %s1975_s27, 4  ;;  %p1788_p0 = scmp.ne.s32.totalorder %s2463_s1, %s1787_s9  ;;  %s38_s28 = int_to_ptr.vmem [resolvable:$true] %s37_s28 }
   0x7   :  { %p1791_p1 = scmp.lt.u32.totalorder %s1787_s9, %s2463_s1 }
   0x9   :  { %p1793_p2 = pnand %p1791_p1, %p1788_p0 }
   0xb   :  { %1796 = shalt.err (!%p1793_p2)
}
   0xc   :  { %s1797_s14 = scalar_lea.vmem %s38_s28, 256  ;;  %p1802_p4 = scmp.lt.s32.totalorder %s38_s28, %s38_s28 }
   0xd   :  { %p1798_p3 = scmp.ne.s32.totalorder %s38_s28, %s1797_s14  ;;  %p1803_p5 = scmp.lt.s32.totalorder %s1797_s14, %s1797_s14 }
   0xf   :  { %p1804_p6 = por %p1803_p5, %p1802_p4 }
  0x11   :  { %p1805_p7 = pnand %p1804_p6, %p1798_p3 }
  0x13   :  { %1808 = shalt.err (!%p1805_p7)
}
  0x14   :  { %s1976_s15 = smov 32   ;;  %s1977_s16 = smov 2  }
  0x15   :  { %43 = dma.hbm_to_vmem [thread:$0]  %s2463_s1, 256, %s38_s28, [#allocation6], %s1976_s15, %s1976_s15, %s1977_s16  }
  0x16   :  { %s1978_s19 = smov [#allocation2]   ;;  %s1809_s23 = scalar_lea.hbm %s2462_s0, 512 }
  0x17   :  { %s25_s20 = sshll.u32 %s1978_s19, 4  ;;  %p1810_p8 = scmp.ne.s32.totalorder %s2462_s0, %s1809_s23  ;;  %s26_s20 = int_to_ptr.vmem [resolvable:$true] %s25_s20 }
  0x18   :  { %p1813_p9 = scmp.lt.u32.totalorder %s1809_s23, %s2462_s0 }
  0x1a   :  { %p1815_p10 = pnand %p1813_p9, %p1810_p8 }
  0x1c   :  { %1818 = shalt.err (!%p1815_p10)
}
  0x1d   :  { %s1819_s29 = scalar_lea.vmem %s26_s20, 512  ;;  %p1824_p12 = scmp.lt.s32.totalorder %s26_s20, %s26_s20 }
  0x1e   :  { %p1820_p11 = scmp.ne.s32.totalorder %s26_s20, %s1819_s29  ;;  %p1825_p13 = scmp.lt.s32.totalorder %s1819_s29, %s1819_s29 }
  0x20   :  { %p1826_p0 = por %p1825_p13, %p1824_p12 }
  0x22   :  { %p1827_p1 = pnand %p1826_p0, %p1820_p11 }
  0x24   :  { %1830 = shalt.err (!%p1827_p1)
}
  0x25   :  { %s1979_s1 = smov 64   ;;  %s1980_s28 = smov 4  }
  0x26   :  { %31 = dma.hbm_to_vmem [thread:$0]  %s2462_s0, 512, %s26_s20, [#allocation3], %s1979_s1, %s1979_s1, %s1980_s28  }
  0x27   :  { %s1981_s10 = smov [#allocation7]   ;;  %s1831_s14 = scalar_lea.hbm %s2464_s2, 1024 }
  0x28   :  { %s49_s11 = sshll.u32 %s1981_s10, 4  ;;  %p1832_p2 = scmp.ne.s32.totalorder %s2464_s2, %s1831_s14  ;;  %s50_s11 = int_to_ptr.vmem [resolvable:$true] %s49_s11 }
  0x29   :  { %p1835_p3 = scmp.lt.u32.totalorder %s1831_s14, %s2464_s2 }
  0x2b   :  { %p1837_p4 = pnand %p1835_p3, %p1832_p2 }
  0x2d   :  { %1840 = shalt.err (!%p1837_p4)
}
  0x2e   :  { %s1841_s22 = scalar_lea.vmem %s50_s11, 1024  ;;  %p1846_p6 = scmp.lt.s32.totalorder %s50_s11, %s50_s11 }
  0x2f   :  { %p1842_p5 = scmp.ne.s32.totalorder %s50_s11, %s1841_s22  ;;  %p1847_p7 = scmp.lt.s32.totalorder %s1841_s22, %s1841_s22 }
  0x31   :  { %p1848_p8 = por %p1847_p7, %p1846_p6 }
  0x33   :  { %p1849_p9 = pnand %p1848_p8, %p1842_p5 }
  0x35   :  { %1852 = shalt.err (!%p1849_p9)
}
  0x36   :  { %s1982_s0 = smov 128   ;;  %s1983_s20 = smov 8  }
  0x37   :  { %55 = dma.hbm_to_vmem [thread:$0]  %s2464_s2, 1024, %s50_s11, [#allocation6], %s1982_s0, %s1982_s0, %s1983_s20  }
  0x38   :  { %s1984_s25 = smov [#allocation8]   ;;  %s1853_s30 = scalar_lea.hbm %s2465_s3, 256 }
  0x39   :  { %s61_s26 = sshll.u32 %s1984_s25, 4  ;;  %p1854_p10 = scmp.ne.s32.totalorder %s2465_s3, %s1853_s30  ;;  %s62_s26 = int_to_ptr.vmem [resolvable:$true] %s61_s26 }
  0x3a   :  { %p1857_p11 = scmp.lt.u32.totalorder %s1853_s30, %s2465_s3 }
  0x3c   :  { %p1859_p12 = pnand %p1857_p11, %p1854_p10 }
  0x3e   :  { %1862 = shalt.err (!%p1859_p12)
}
  0x3f   :  { %s1863_s14 = scalar_lea.vmem %s62_s26, 256  ;;  %p1868_p0 = scmp.lt.s32.totalorder %s62_s26, %s62_s26 }
  0x40   :  { %p1864_p13 = scmp.ne.s32.totalorder %s62_s26, %s1863_s14  ;;  %p1869_p1 = scmp.lt.s32.totalorder %s1863_s14, %s1863_s14 }
  0x42   :  { %p1870_p2 = por %p1869_p1, %p1868_p0 }
  0x44   :  { %p1871_p3 = pnand %p1870_p2, %p1864_p13 }
  0x46   :  { %1874 = shalt.err (!%p1871_p3)
}
  0x47   :  { %67 = dma.hbm_to_vmem [thread:$0]  %s2465_s3, 256, %s62_s26, [#allocation9], %s1979_s1, %s1979_s1, %s1980_s28  }
  0x48   :  { %1963 = dma.done.wait [#allocation3], 512  }
  0x49   :  { %1964 = vsyncadd [#allocation3], 4294966784 }
  0x4a   :  { %1965 = dma.done.wait [#allocation6], 1280  }
  0x4b   :  { %1966 = vsyncadd [#allocation6], 4294966016 }
  0x4c   :  { %1967 = dma.done.wait [#allocation9], 256  }
  0x4d   :  { %1968 = vsyncadd [#allocation9], 4294967040  ;;  %v1985_v0 = vmov 0   ;;  %v2098_v1 = vld [vmem:[#allocation7 + $0x4] ss:$8 sps:$4 sm:$0xff]   ;;  %v184_v11 = vlaneseq  ;;  %vm133_vm0 = vcmask 523264  }
  0x4e   :  { %169 = vmatprep.mubr.bf16.mxu0 %v1985_v0  ;;  %275 = vmatprep.mubr.bf16.mxu1 %v1985_v0  ;;  %v2100_v2 = vld [vmem:[#allocation7] ss:$8 sps:$4 sm:$0xff]   ;;  %v2103_v3 = vld [vmem:[#allocation7 + $0x14] ss:$8 sps:$4 sm:$0xff]   ;;  %v2107_v4 = vld [vmem:[#allocation7 + $0x10] ss:$8 sps:$4 sm:$0xff]  }
  0x4f   :  { %137 = vmatprep.subr.bf16.mxu0 %v2098_v1  ;;  %243 = vmatprep.subr.bf16.mxu1 %v2098_v1  ;;  %v2111_v5 = vld [vmem:[#allocation7 + $0x24] ss:$8 sps:$4 sm:$0xff]   ;;  %v2115_v6 = vld [vmem:[#allocation7 + $0x20] ss:$8 sps:$4 sm:$0xff]   ;;  %v2119_v7 = vld [vmem:[#allocation7 + $0x34] ss:$8 sps:$4 sm:$0xff]  }
  0x50   :  { %138 = vmatpush1.bf16.msra.mxu0 %v2100_v2  ;;  %244 = vmatpush1.bf16.msra.mxu1 %v2100_v2  ;;  %v2123_v8 = vld [vmem:[#allocation7 + $0x30] ss:$8 sps:$4 sm:$0xff]   ;;  %v1986_v9 = vmov 1983009808   ;;  %v185_v13 = vshrl.u32 %v184_v11, 7  ;;  %vm1988_vm1 = vmmov 0  }
  0x51   :  { %139 = vmatprep.subr.bf16.mxu0 %v2103_v3  ;;  %245 = vmatprep.subr.bf16.mxu1 %v2103_v3  ;;  %v182_v10 = vunpack.c.l.s4 %v1986_v9  ;;  %v91_v19 = vld [vmem:[#allocation2] sm:$0xf]  ;;  %v236_v53 = vld [vmem:[#allocation2 + $0x4] sm:$0xf]  ;;  %s1989_s3 = smov 96   ;;  %vm1477_vm2 = vcmask 254976  }
  0x52   :  { %v92_v35 = vld [vmem:[#allocation5] sm:$0x3]  ;;  %vm1090_vm3 = vcmask 261120   ;;  %s1990_s17 = smov [#allocation10]  }
  0x53   :  { %v183_v12 = vunpack.c.0.s8 %v182_v10  ;;  %v218_v37 = vsub.f32 1.0, %v92_v35  ;;  %s1511_s18 = sshll.u32 %s1990_s17, 4  ;;  %s1512_s18 = int_to_ptr.vmem [resolvable:$true] %s1511_s18 }
  0x54   :  { %140 = vmatpush1.bf16.msra.mxu0 %v2107_v4  ;;  %246 = vmatpush1.bf16.msra.mxu1 %v2107_v4  ;;  %p1880_p5 = scmp.lt.s32.totalorder %s1512_s18, %s1512_s18 }
  0x55   :  { %141 = vmatprep.subr.bf16.mxu0 %v2111_v5  ;;  %247 = vmatprep.subr.bf16.mxu1 %v2111_v5  ;;  %v2142_v15 = vsub.s32 %v183_v12, %v185_v13  ;;  %v220_v41 = vmul.f32 0.0, %v218_v37 }
  0x58   :  { %142 = vmatpush1.bf16.msra.mxu0 %v2115_v6  ;;  %248 = vmatpush1.bf16.msra.mxu1 %v2115_v6 }
  0x59   :  { %143 = vmatprep.subr.bf16.mxu0 %v2119_v7  ;;  %249 = vmatprep.subr.bf16.mxu1 %v2119_v7 }
  0x5c   :  { %144 = vmatpush1.bf16.msra.mxu0 %v2123_v8  ;;  %250 = vmatpush1.bf16.msra.mxu1 %v2123_v8 }
  0x5d   :  { %361 = vmatprep.subr.bf16.mxu0 %v2098_v1  ;;  %479 = vmatprep.subr.bf16.mxu1 %v2098_v1 }
  0x5f   :  { %170 = vmatmul.mubr.bf16.vlgmr.msra.gmra.mrb[0].mxu0 %v1985_v0 }
  0x60   :  { %362 = vmatpush1.bf16.msra.mxu0 %v2100_v2  ;;  %393 = vmatprep.mubr.bf16.mxu0 %v1985_v0 }
  0x61   :  { %363 = vmatprep.subr.bf16.mxu0 %v2103_v3 }
  0x64   :  { %364 = vmatpush1.bf16.msra.mxu0 %v2107_v4 }
  0x65   :  { %365 = vmatprep.subr.bf16.mxu0 %v2111_v5 }
  0x68   :  { %366 = vmatpush1.bf16.msra.mxu0 %v2115_v6 }
  0x69   :  { %367 = vmatprep.subr.bf16.mxu0 %v2119_v7 }
  0x6c   :  { %368 = vmatpush1.bf16.msra.mxu0 %v2123_v8 }
  0x6d   :  { %597 = vmatprep.subr.bf16.mxu0 %v2098_v1 }
 0x132   :  { %v171_v14 = vpop.f32.mrb[0].mxu0 }
 0x133   :  { %v173_v16 = vpop.f32.mrb[1].mxu0 }
 0x134   :  { %v180_v17 = vcombine.low %v171_v14, %v173_v16  ;;  %v175_v18 = vpop.f32.mrb[2].mxu0 }
 0x135   :  { %v176_v20 = vpop.f32.mrb[3].mxu0 }
 0x136   :  { %v187_v21 = vrot.slane %v180_v17, %v2142_v15  ;;  %v238_v17 = vld [vmem:[#allocation5 + $0x2] sm:$0x3] }
 0x137   :  { %v335_v18 = vsub.f32 1.0, %v238_v17 }
 0x138   :  { %v189_v22 = vadd.f32 %v187_v21, %v91_v19 }
 0x13a   :  { %v1576_v23 = vmul.f32 -1.442695, %v189_v22 }
 0x13c   :  { %1723 = vpow2.f32 %v1576_v23 }
 0x13d   :  { %1725 = vtanh.f32 %v189_v22 }
 0x146   :  { %v1724_v24 = vpop.eup %1723 }
 0x147   :  { %v193_v25 = vadd.f32 1.0, %v1724_v24  ;;  %v1726_v26 = vpop.eup %1725 }
 0x148   :  { %v199_v27 = vrot.slane %v1726_v26, 2 }
 0x149   :  { %1727 = vrcp.f32 %v193_v25 }
 0x153   :  { %v1728_v28 = vpop.eup %1727 }
 0x154   :  { %v201_v29 = vmul.f32 %v1728_v28, %v199_v27  ;;  %v197_v30 = vmul.f32 0.0, %v1728_v28 }
 0x156   :  { %203 = vrot.lane.b32.xlu0 %v201_v29, %s1979_s1 }
 0x15a   :  { %209 = vrot.lane.b32.xlu0 %v1728_v28, %s1979_s1 }
 0x1c8   :  { %v204_v31 = vpop.permute.xlu0 %203 }
 0x1c9   :  { %v206_v32 = vadd.f32 %v204_v31, %v197_v30 }
 0x1cb   :  { %1729 = vtanh.f32 %v206_v32  ;;  %v229_v34 = vrot.slane %v206_v32, %v2142_v15 }
 0x1cc   :  { %v210_v36 = vpop.permute.xlu0 %209 }
 0x1cd   :  { %v211_v38 = vrot.slane %v210_v36, 2 }
 0x1d5   :  { %v1730_v33 = vpop.eup %1729 }
 0x1d6   :  { %214 = vrot.lane.b32.xlu1 %v1730_v33, %s1979_s1 }
 0x1da   :  { %230 = vrot.lane.b32.xlu1 %v229_v34, %s1979_s1 }
 0x248   :  { %v215_v39 = vpop.permute.xlu1 %214 }
 0x249   :  { %v217_v40 = vmul.f32 %v215_v39, %v211_v38 }
 0x24b   :  { %v2150_v42 = vmul.f32 %v217_v40, %v92_v35 }
 0x24c   :  { %v231_v43 = vpop.permute.xlu1 %230 }
 0x24d   :  { %v221_v44 = vadd.f32 %v220_v41, %v2150_v42  ;;  %v233_v45 = vmul.f32 %v231_v43, %v92_v35  ;;  %v354_v35 = vld [vmem:[#allocation2 + $0x8] sm:$0xf] }
 0x24f   :  { %v234_v46 = vadd.f32 %v233_v45, %v220_v41  ;;  %v239_v47 = vpack.c.bf16 %v221_v44, %v221_v44  ;;  %v337_v27 = vmul.f32 %v335_v18, %v221_v44 }
 0x251   :  { %1577 = vmatmul.mubr.msk.bf16.vlgmr.msra.gmra.mrb[0].mxu1 %vm133_vm0, %v239_v47  ;;  %v310_v48 = vrot.slane %v234_v46, %v2142_v15  ;;  %v351_v20 = vmul.f32 %v335_v18, %v234_v46  ;;  %v472_v18 = vld [vmem:[#allocation2 + $0xc] sm:$0xf] }
 0x252   :  { %480 = vmatpush1.bf16.msra.mxu1 %v2100_v2  ;;  %511 = vmatprep.mubr.bf16.mxu1 %v1985_v0 }
 0x253   :  { %311 = vrot.lane.b32.xlu0 %v310_v48, %s1979_s1  ;;  %481 = vmatprep.subr.bf16.mxu1 %v2103_v3 }
 0x256   :  { %482 = vmatpush1.bf16.msra.mxu1 %v2107_v4 }
 0x257   :  { %483 = vmatprep.subr.bf16.mxu1 %v2111_v5 }
 0x25a   :  { %484 = vmatpush1.bf16.msra.mxu1 %v2115_v6 }
 0x25b   :  { %485 = vmatprep.subr.bf16.mxu1 %v2119_v7 }
 0x25e   :  { %486 = vmatpush1.bf16.msra.mxu1 %v2123_v8 }
 0x25f   :  { %715 = vmatprep.subr.bf16.mxu1 %v2098_v1 }
 0x2c5   :  { %v312_v9 = vpop.permute.xlu0 %311 }
 0x324   :  { %v277_v49 = vpop.f32.mrb[0].mxu1 }
 0x325   :  { %v279_v50 = vpop.f32.mrb[1].mxu1 }
 0x326   :  { %v286_v51 = vcombine.low %v277_v49, %v279_v50  ;;  %v281_v52 = vpop.f32.mrb[2].mxu1 }
 0x327   :  { %v282_v54 = vpop.f32.mrb[3].mxu1 }
 0x328   :  { %v293_v55 = vrot.slane %v286_v51, %v2142_v15 }
 0x32a   :  { %v295_v56 = vadd.f32 %v293_v55, %v236_v53  ;;  %v356_v53 = vld [vmem:[#allocation5 + $0x4] sm:$0x3] }
 0x32b   :  { %v453_v55 = vsub.f32 1.0, %v356_v53 }
 0x32c   :  { %v1578_v57 = vmul.f32 -1.442695, %v295_v56 }
 0x32e   :  { %1731 = vpow2.f32 %v1578_v57 }
 0x32f   :  { %1733 = vtanh.f32 %v295_v56 }
 0x338   :  { %v1732_v58 = vpop.eup %1731 }
 0x339   :  { %v299_v59 = vadd.f32 1.0, %v1732_v58  ;;  %v1734_v60 = vpop.eup %1733 }
 0x33a   :  { %v316_v61 = vrot.slane %v1734_v60, 2 }
 0x33b   :  { %1735 = vrcp.f32 %v299_v59 }
 0x345   :  { %v1736_v62 = vpop.eup %1735 }
 0x346   :  { %326 = vrot.lane.b32.xlu0 %v1736_v62, %s1979_s1  ;;  %v318_v63 = vmul.f32 %v1736_v62, %v316_v61  ;;  %v314_v10 = vmul.f32 %v1736_v62, %v312_v9 }
 0x348   :  { %320 = vrot.lane.b32.xlu1 %v318_v63, %s1979_s1 }
 0x3b8   :  { %v327_v16 = vpop.permute.xlu0 %326 }
 0x3b9   :  { %v328_v24 = vrot.slane %v327_v16, 2 }
 0x3ba   :  { %v321_v11 = vpop.permute.xlu1 %320 }
 0x3bb   :  { %v323_v12 = vadd.f32 %v321_v11, %v314_v10 }
 0x3bd   :  { %1737 = vtanh.f32 %v323_v12  ;;  %v346_v13 = vrot.slane %v323_v12, %v2142_v15 }
 0x3bf   :  { %347 = vrot.lane.b32.xlu0 %v346_v13, %s1979_s1 }
 0x3c7   :  { %v1738_v14 = vpop.eup %1737 }
 0x3c8   :  { %331 = vrot.lane.b32.xlu1 %v1738_v14, %s1979_s1 }
 0x431   :  { %v348_v19 = vpop.permute.xlu0 %347 }
 0x432   :  { %v350_v21 = vmul.f32 %v348_v19, %v238_v17 }
 0x434   :  { %v352_v22 = vadd.f32 %v351_v20, %v350_v21 }
 0x436   :  { %v428_v23 = vrot.slane %v352_v22, %v2142_v15  ;;  %v469_v57 = vmul.f32 %v453_v55, %v352_v22 }
 0x438   :  { %429 = vrot.lane.b32.xlu1 %v428_v23, %s1979_s1 }
 0x43a   :  { %v332_v25 = vpop.permute.xlu1 %331 }
 0x43b   :  { %v334_v26 = vmul.f32 %v332_v25, %v328_v24 }
 0x43d   :  { %v2173_v28 = vmul.f32 %v334_v26, %v238_v17 }
 0x43f   :  { %v338_v29 = vadd.f32 %v337_v27, %v2173_v28 }
 0x441   :  { %v357_v30 = vpack.c.bf16 %v338_v29, %v338_v29  ;;  %v455_v9 = vmul.f32 %v453_v55, %v338_v29  ;;  %v590_v55 = vld [vmem:[#allocation2 + $0x10] sm:$0xf] }
 0x443   :  { %1579 = vmatmul.mubr.msk.bf16.vlgmr.msra.gmra.mrb[4].mxu0 %vm133_vm0, %v357_v30 }
 0x444   :  { %598 = vmatpush1.bf16.msra.mxu0 %v2100_v2  ;;  %629 = vmatprep.mubr.bf16.mxu0 %v1985_v0 }
 0x445   :  { %599 = vmatprep.subr.bf16.mxu0 %v2103_v3 }
 0x448   :  { %600 = vmatpush1.bf16.msra.mxu0 %v2107_v4 }
 0x449   :  { %601 = vmatprep.subr.bf16.mxu0 %v2111_v5 }
 0x44c   :  { %602 = vmatpush1.bf16.msra.mxu0 %v2115_v6 }
 0x44d   :  { %603 = vmatprep.subr.bf16.mxu0 %v2119_v7 }
 0x450   :  { %604 = vmatpush1.bf16.msra.mxu0 %v2123_v8 }
 0x451   :  { %833 = vmatprep.subr.bf16.mxu0 %v2098_v1 }
 0x4aa   :  { %v430_v47 = vpop.permute.xlu1 %429 }
 0x516   :  { %v395_v31 = vpop.f32.mrb[4].mxu0 }
 0x517   :  { %v397_v32 = vpop.f32.mrb[5].mxu0 }
 0x518   :  { %v404_v33 = vcombine.low %v395_v31, %v397_v32  ;;  %v399_v34 = vpop.f32.mrb[6].mxu0 }
 0x519   :  { %v400_v36 = vpop.f32.mrb[7].mxu0 }
 0x51a   :  { %v411_v37 = vrot.slane %v404_v33, %v2142_v15 }
 0x51c   :  { %v413_v38 = vadd.f32 %v411_v37, %v354_v35  ;;  %v474_v35 = vld [vmem:[#allocation5 + $0x6] sm:$0x3] }
 0x51d   :  { %v571_v37 = vsub.f32 1.0, %v474_v35 }
 0x51e   :  { %v1580_v39 = vmul.f32 -1.442695, %v413_v38 }
 0x520   :  { %1739 = vpow2.f32 %v1580_v39 }
 0x521   :  { %1741 = vtanh.f32 %v413_v38 }
 0x52a   :  { %v1740_v40 = vpop.eup %1739 }
 0x52b   :  { %v417_v41 = vadd.f32 1.0, %v1740_v40  ;;  %v1742_v43 = vpop.eup %1741 }
 0x52c   :  { %v434_v44 = vrot.slane %v1742_v43, 2 }
 0x52d   :  { %1743 = vrcp.f32 %v417_v41 }
 0x537   :  { %v1744_v45 = vpop.eup %1743 }
 0x538   :  { %444 = vrot.lane.b32.xlu1 %v1744_v45, %s1979_s1  ;;  %v436_v46 = vmul.f32 %v1744_v45, %v434_v44  ;;  %v432_v48 = vmul.f32 %v1744_v45, %v430_v47 }
 0x53a   :  { %438 = vrot.lane.b32.xlu0 %v436_v46, %s1979_s1 }
 0x5aa   :  { %v445_v54 = vpop.permute.xlu1 %444 }
 0x5ab   :  { %v446_v61 = vrot.slane %v445_v54, 2 }
 0x5ac   :  { %v439_v49 = vpop.permute.xlu0 %438 }
 0x5ad   :  { %v441_v50 = vadd.f32 %v439_v49, %v432_v48 }
 0x5af   :  { %1745 = vtanh.f32 %v441_v50  ;;  %v464_v51 = vrot.slane %v441_v50, %v2142_v15 }
 0x5b1   :  { %465 = vrot.lane.b32.xlu1 %v464_v51, %s1979_s1 }
 0x5b9   :  { %v1746_v52 = vpop.eup %1745 }
 0x5ba   :  { %449 = vrot.lane.b32.xlu0 %v1746_v52, %s1979_s1 }
 0x623   :  { %v466_v56 = vpop.permute.xlu1 %465 }
 0x624   :  { %v468_v58 = vmul.f32 %v466_v56, %v356_v53 }
 0x626   :  { %v470_v59 = vadd.f32 %v469_v57, %v468_v58 }
 0x628   :  { %v546_v60 = vrot.slane %v470_v59, %v2142_v15  ;;  %v587_v39 = vmul.f32 %v571_v37, %v470_v59 }
 0x62a   :  { %547 = vrot.lane.b32.xlu0 %v546_v60, %s1979_s1 }
 0x62c   :  { %v450_v62 = vpop.permute.xlu0 %449 }
 0x62d   :  { %v452_v63 = vmul.f32 %v450_v62, %v446_v61 }
 0x62f   :  { %v2194_v10 = vmul.f32 %v452_v63, %v356_v53 }
 0x631   :  { %v456_v11 = vadd.f32 %v455_v9, %v2194_v10 }
 0x633   :  { %v475_v12 = vpack.c.bf16 %v456_v11, %v456_v11  ;;  %v573_v47 = vmul.f32 %v571_v37, %v456_v11 }
 0x635   :  { %1581 = vmatmul.mubr.msk.bf16.vlgmr.msra.gmra.mrb[4].mxu1 %vm133_vm0, %v475_v12 }
 0x636   :  { %716 = vmatpush1.bf16.msra.mxu1 %v2100_v2  ;;  %747 = vmatprep.mubr.bf16.mxu1 %v1985_v0 }
 0x637   :  { %717 = vmatprep.subr.bf16.mxu1 %v2103_v3 }
 0x63a   :  { %718 = vmatpush1.bf16.msra.mxu1 %v2107_v4 }
 0x63b   :  { %719 = vmatprep.subr.bf16.mxu1 %v2111_v5 }
 0x63e   :  { %720 = vmatpush1.bf16.msra.mxu1 %v2115_v6 }
 0x63f   :  { %721 = vmatprep.subr.bf16.mxu1 %v2119_v7 }
 0x642   :  { %722 = vmatpush1.bf16.msra.mxu1 %v2123_v8 }
 0x643   :  { %951 = vmatprep.subr.bf16.mxu1 %v2098_v1 }
 0x69c   :  { %v548_v29 = vpop.permute.xlu0 %547 }
 0x708   :  { %v513_v13 = vpop.f32.mrb[4].mxu1 }
 0x709   :  { %v515_v14 = vpop.f32.mrb[5].mxu1 }
 0x70a   :  { %v522_v16 = vcombine.low %v513_v13, %v515_v14  ;;  %v517_v17 = vpop.f32.mrb[6].mxu1 }
 0x70b   :  { %v518_v19 = vpop.f32.mrb[7].mxu1 }
 0x70c   :  { %v529_v20 = vrot.slane %v522_v16, %v2142_v15  ;;  %v592_v19 = vld [vmem:[#allocation5 + $0x8] sm:$0x3] }
 0x70e   :  { %v531_v21 = vadd.f32 %v529_v20, %v472_v18 }
 0x710   :  { %v1582_v22 = vmul.f32 -1.442695, %v531_v21 }
 0x712   :  { %1747 = vpow2.f32 %v1582_v22 }
 0x713   :  { %1749 = vtanh.f32 %v531_v21  ;;  %v689_v21 = vsub.f32 1.0, %v592_v19 }
 0x71c   :  { %v1748_v23 = vpop.eup %1747 }
 0x71d   :  { %v535_v24 = vadd.f32 1.0, %v1748_v23  ;;  %v1750_v25 = vpop.eup %1749 }
 0x71e   :  { %v552_v26 = vrot.slane %v1750_v25, 2 }
 0x71f   :  { %1751 = vrcp.f32 %v535_v24 }
 0x729   :  { %v1752_v27 = vpop.eup %1751 }
 0x72a   :  { %562 = vrot.lane.b32.xlu0 %v1752_v27, %s1979_s1  ;;  %v554_v1 = vmul.f32 %v1752_v27, %v552_v26  ;;  %v550_v30 = vmul.f32 %v1752_v27, %v548_v29 }
 0x72c   :  { %556 = vrot.lane.b32.xlu1 %v554_v1, %s1979_s1 }
 0x79c   :  { %v563_v36 = vpop.permute.xlu0 %562 }
 0x79d   :  { %v564_v44 = vrot.slane %v563_v36, 2 }
 0x79e   :  { %v557_v31 = vpop.permute.xlu1 %556 }
 0x79f   :  { %v559_v32 = vadd.f32 %v557_v31, %v550_v30 }
 0x7a1   :  { %1753 = vtanh.f32 %v559_v32  ;;  %v582_v33 = vrot.slane %v559_v32, %v2142_v15 }
 0x7a3   :  { %583 = vrot.lane.b32.xlu0 %v582_v33, %s1979_s1 }
 0x7ab   :  { %v1754_v34 = vpop.eup %1753 }
 0x7ac   :  { %567 = vrot.lane.b32.xlu1 %v1754_v34, %s1979_s1 }
 0x815   :  { %v584_v38 = vpop.permute.xlu0 %583 }
 0x816   :  { %v586_v40 = vmul.f32 %v584_v38, %v474_v35  ;;  %v708_v38 = vld [vmem:[#allocation2 + $0x14] sm:$0xf] }
 0x818   :  { %v588_v41 = vadd.f32 %v587_v39, %v586_v40 }
 0x81a   :  { %v664_v43 = vrot.slane %v588_v41, %v2142_v15  ;;  %v705_v23 = vmul.f32 %v689_v21, %v588_v41 }
 0x81c   :  { %665 = vrot.lane.b32.xlu1 %v664_v43, %s1979_s1 }
 0x81e   :  { %v568_v45 = vpop.permute.xlu1 %567 }
 0x81f   :  { %v570_v46 = vmul.f32 %v568_v45, %v564_v44 }
 0x821   :  { %v2215_v48 = vmul.f32 %v570_v46, %v474_v35 }
 0x823   :  { %v574_v49 = vadd.f32 %v573_v47, %v2215_v48 }
 0x825   :  { %v593_v50 = vpack.c.bf16 %v574_v49, %v574_v49  ;;  %v691_v30 = vmul.f32 %v689_v21, %v574_v49  ;;  %v710_v49 = vld [vmem:[#allocation5 + $0xa] sm:$0x3] }
 0x827   :  { %1583 = vmatmul.mubr.msk.bf16.vlgmr.msra.gmra.mrb[8].mxu0 %vm133_vm0, %v593_v50 }
 0x828   :  { %834 = vmatpush1.bf16.msra.mxu0 %v2100_v2  ;;  %865 = vmatprep.mubr.bf16.mxu0 %v1985_v0 }
 0x829   :  { %835 = vmatprep.subr.bf16.mxu0 %v2103_v3 }
 0x82c   :  { %836 = vmatpush1.bf16.msra.mxu0 %v2107_v4 }
 0x82d   :  { %837 = vmatprep.subr.bf16.mxu0 %v2111_v5 }
 0x830   :  { %838 = vmatpush1.bf16.msra.mxu0 %v2115_v6 }
 0x831   :  { %839 = vmatprep.subr.bf16.mxu0 %v2119_v7 }
 0x834   :  { %840 = vmatpush1.bf16.msra.mxu0 %v2123_v8 }
 0x88e   :  { %v666_v12 = vpop.permute.xlu1 %665 }
 0x8fa   :  { %v631_v51 = vpop.f32.mrb[8].mxu0 }
 0x8fb   :  { %v633_v52 = vpop.f32.mrb[9].mxu0 }
 0x8fc   :  { %v640_v53 = vcombine.low %v631_v51, %v633_v52  ;;  %v635_v54 = vpop.f32.mrb[10].mxu0  ;;  %v807_v51 = vsub.f32 1.0, %v710_v49 }
 0x8fd   :  { %v636_v56 = vpop.f32.mrb[11].mxu0 }
 0x8fe   :  { %v647_v57 = vrot.slane %v640_v53, %v2142_v15 }
 0x900   :  { %v649_v58 = vadd.f32 %v647_v57, %v590_v55 }
 0x902   :  { %v1584_v59 = vmul.f32 -1.442695, %v649_v58 }
 0x904   :  { %1755 = vpow2.f32 %v1584_v59 }
 0x905   :  { %1757 = vtanh.f32 %v649_v58 }
 0x90e   :  { %v1756_v60 = vpop.eup %1755 }
 0x90f   :  { %v653_v61 = vadd.f32 1.0, %v1756_v60  ;;  %v1758_v62 = vpop.eup %1757 }
 0x910   :  { %v670_v63 = vrot.slane %v1758_v62, 2 }
 0x911   :  { %1759 = vrcp.f32 %v653_v61 }
 0x91b   :  { %v1760_v9 = vpop.eup %1759 }
 0x91c   :  { %680 = vrot.lane.b32.xlu1 %v1760_v9, %s1979_s1  ;;  %v672_v11 = vmul.f32 %v1760_v9, %v670_v63  ;;  %v668_v13 = vmul.f32 %v1760_v9, %v666_v12 }
 0x91e   :  { %674 = vrot.lane.b32.xlu0 %v672_v11, %s1979_s1 }
 0x98e   :  { %v681_v20 = vpop.permute.xlu1 %680 }
 0x98f   :  { %v682_v27 = vrot.slane %v681_v20, 2 }
 0x990   :  { %v675_v14 = vpop.permute.xlu0 %674 }
 0x991   :  { %v677_v16 = vadd.f32 %v675_v14, %v668_v13  ;;  %v826_v14 = vld [vmem:[#allocation2 + $0x18] sm:$0xf] }
 0x993   :  { %1761 = vtanh.f32 %v677_v16  ;;  %v700_v17 = vrot.slane %v677_v16, %v2142_v15 }
 0x995   :  { %701 = vrot.lane.b32.xlu1 %v700_v17, %s1979_s1 }
 0x99d   :  { %v1762_v18 = vpop.eup %1761 }
 0x99e   :  { %685 = vrot.lane.b32.xlu0 %v1762_v18, %s1979_s1 }
 0xa07   :  { %v702_v22 = vpop.permute.xlu1 %701 }
 0xa08   :  { %v704_v24 = vmul.f32 %v702_v22, %v592_v19 }
 0xa0a   :  { %v706_v25 = vadd.f32 %v705_v23, %v704_v24 }
 0xa0c   :  { %v782_v26 = vrot.slane %v706_v25, %v2142_v15  ;;  %v823_v53 = vmul.f32 %v807_v51, %v706_v25 }
 0xa0e   :  { %783 = vrot.lane.b32.xlu0 %v782_v26, %s1979_s1 }
 0xa10   :  { %v686_v1 = vpop.permute.xlu0 %685 }
 0xa11   :  { %v688_v29 = vmul.f32 %v686_v1, %v682_v27 }
 0xa13   :  { %v2235_v31 = vmul.f32 %v688_v29, %v592_v19 }
 0xa15   :  { %v692_v32 = vadd.f32 %v691_v30, %v2235_v31 }
 0xa17   :  { %v711_v33 = vpack.c.bf16 %v692_v32, %v692_v32  ;;  %v809_v60 = vmul.f32 %v807_v51, %v692_v32 }
 0xa19   :  { %1585 = vmatmul.mubr.msk.bf16.vlgmr.msra.gmra.mrb[8].mxu1 %vm133_vm0, %v711_v33  ;;  %v828_v33 = vld [vmem:[#allocation5 + $0xc] sm:$0x3] }
 0xa1a   :  { %952 = vmatpush1.bf16.msra.mxu1 %v2100_v2  ;;  %983 = vmatprep.mubr.bf16.mxu1 %v1985_v0 }
 0xa1b   :  { %953 = vmatprep.subr.bf16.mxu1 %v2103_v3 }
 0xa1e   :  { %954 = vmatpush1.bf16.msra.mxu1 %v2107_v4 }
 0xa1f   :  { %955 = vmatprep.subr.bf16.mxu1 %v2111_v5 }
 0xa22   :  { %956 = vmatpush1.bf16.msra.mxu1 %v2115_v6 }
 0xa23   :  { %957 = vmatprep.subr.bf16.mxu1 %v2119_v7 }
 0xa26   :  { %958 = vmatpush1.bf16.msra.mxu1 %v2123_v8 }
 0xa80   :  { %v784_v41 = vpop.permute.xlu0 %783 }
 0xaec   :  { %v749_v34 = vpop.f32.mrb[8].mxu1 }
 0xaed   :  { %v751_v35 = vpop.f32.mrb[9].mxu1 }
 0xaee   :  { %v758_v36 = vcombine.low %v749_v34, %v751_v35  ;;  %v753_v37 = vpop.f32.mrb[10].mxu1  ;;  %v925_v35 = vsub.f32 1.0, %v828_v33 }
 0xaef   :  { %v754_v2 = vpop.f32.mrb[11].mxu1 }
 0xaf0   :  { %v765_v0 = vrot.slane %v758_v36, %v2142_v15  ;;  %v2265_v36 = vld [vmem:[#allocation5 + $0xe] sm:$0x3] }
 0xaf2   :  { %v767_v39 = vadd.f32 %v765_v0, %v708_v38  ;;  %v1043_v0 = vsub.f32 1.0, %v2265_v36 }
 0xaf4   :  { %v1586_v3 = vmul.f32 -1.442695, %v767_v39 }
 0xaf6   :  { %1763 = vpow2.f32 %v1586_v3 }
 0xaf7   :  { %1765 = vtanh.f32 %v767_v39 }
 0xb00   :  { %v1764_v4 = vpop.eup %1763 }
 0xb01   :  { %v771_v5 = vadd.f32 1.0, %v1764_v4  ;;  %v1766_v6 = vpop.eup %1765 }
 0xb02   :  { %v788_v40 = vrot.slane %v1766_v6, 2 }
 0xb03   :  { %1767 = vrcp.f32 %v771_v5 }
 0xb0d   :  { %v1768_v7 = vpop.eup %1767 }
 0xb0e   :  { %798 = vrot.lane.b32.xlu0 %v1768_v7, %s1979_s1  ;;  %v790_v8 = vmul.f32 %v1768_v7, %v788_v40  ;;  %v786_v43 = vmul.f32 %v1768_v7, %v784_v41 }
 0xb10   :  { %792 = vrot.lane.b32.xlu1 %v790_v8, %s1979_s1 }
 0xb80   :  { %v799_v50 = vpop.permute.xlu0 %798 }
 0xb81   :  { %v800_v57 = vrot.slane %v799_v50, 2 }
 0xb82   :  { %v793_v44 = vpop.permute.xlu1 %792 }
 0xb83   :  { %v795_v45 = vadd.f32 %v793_v44, %v786_v43 }
 0xb85   :  { %1769 = vtanh.f32 %v795_v45  ;;  %v818_v46 = vrot.slane %v795_v45, %v2142_v15 }
 0xb87   :  { %819 = vrot.lane.b32.xlu0 %v818_v46, %s1979_s1 }
 0xb8f   :  { %v1770_v47 = vpop.eup %1769 }
 0xb90   :  { %803 = vrot.lane.b32.xlu1 %v1770_v47, %s1979_s1 }
 0xbf9   :  { %v820_v52 = vpop.permute.xlu0 %819 }
 0xbfa   :  { %v822_v54 = vmul.f32 %v820_v52, %v710_v49 }
 0xbfc   :  { %v824_v55 = vadd.f32 %v823_v53, %v822_v54 }
 0xbfe   :  { %v900_v56 = vrot.slane %v824_v55, %v2142_v15  ;;  %v941_v38 = vmul.f32 %v925_v35, %v824_v55 }
 0xc00   :  { %901 = vrot.lane.b32.xlu1 %v900_v56, %s1979_s1 }
 0xc02   :  { %v804_v58 = vpop.permute.xlu1 %803 }
 0xc03   :  { %v806_v59 = vmul.f32 %v804_v58, %v800_v57 }
 0xc05   :  { %v2255_v61 = vmul.f32 %v806_v59, %v710_v49  ;;  %v944_v49 = vld [vmem:[#allocation2 + $0x1c] sm:$0xf] }
 0xc07   :  { %v810_v62 = vadd.f32 %v809_v60, %v2255_v61 }
 0xc09   :  { %v829_v63 = vpack.c.bf16 %v810_v62, %v810_v62  ;;  %v927_v7 = vmul.f32 %v925_v35, %v810_v62 }
 0xc0b   :  { %1587 = vmatmul.mubr.msk.bf16.vlgmr.msra.gmra.mrb[12].mxu0 %vm133_vm0, %v829_v63 }
 0xc72   :  { %v902_v26 = vpop.permute.xlu1 %901 }
 0xcde   :  { %v867_v9 = vpop.f32.mrb[12].mxu0 }
 0xcdf   :  { %v869_v11 = vpop.f32.mrb[13].mxu0 }
 0xce0   :  { %v876_v12 = vcombine.low %v867_v9, %v869_v11  ;;  %v871_v13 = vpop.f32.mrb[14].mxu0  ;;  %v2281_v9 = vld [vmem:[#allocation8] sm:$0xff]  }
 0xce1   :  { %v872_v16 = vpop.f32.mrb[15].mxu0  ;;  %v2292_v13 = vld [vmem:[#allocation8 + $0x8] sm:$0xff]  }
 0xce2   :  { %v883_v17 = vrot.slane %v876_v12, %v2142_v15  ;;  %v1987_v12 = vmov 0.0  }
 0xce3   :  { %1634 = vmatprep.subr.bf16.mxu1 %v1987_v12  ;;  %1626 = vmatprep.subr.bf16.mxu0 %v1987_v12 }
 0xce4   :  { %v885_v18 = vadd.f32 %v883_v17, %v826_v14  ;;  %1627 = vmatpush3.bf16.msra.mxu0 %v2281_v9  ;;  %1630 = vmatprep.mubr.msk.bf16.mxu0 %vm1988_vm1, %v1987_v12 }
 0xce5   :  { %1628 = vmatprep.subr.bf16.mxu0 %v1987_v12 }
 0xce6   :  { %v1588_v19 = vmul.f32 -1.442695, %v885_v18 }
 0xce8   :  { %1771 = vpow2.f32 %v1588_v19  ;;  %1629 = vmatpush3.bf16.msra.mxu0 %v2292_v13 }
 0xce9   :  { %1773 = vtanh.f32 %v885_v18  ;;  %1642 = vmatprep.subr.bf16.mxu0 %v1987_v12 }
 0xcf2   :  { %v1772_v20 = vpop.eup %1771 }
 0xcf3   :  { %v889_v21 = vadd.f32 1.0, %v1772_v20  ;;  %v1774_v22 = vpop.eup %1773 }
 0xcf4   :  { %v906_v23 = vrot.slane %v1774_v22, 2 }
 0xcf5   :  { %1775 = vrcp.f32 %v889_v21 }
 0xcff   :  { %v1776_v24 = vpop.eup %1775 }
 0xd00   :  { %916 = vrot.lane.b32.xlu1 %v1776_v24, %s1979_s1  ;;  %v908_v25 = vmul.f32 %v1776_v24, %v906_v23  ;;  %v904_v27 = vmul.f32 %v1776_v24, %v902_v26 }
 0xd02   :  { %910 = vrot.lane.b32.xlu0 %v908_v25, %s1979_s1 }
 0xd72   :  { %v917_v34 = vpop.permute.xlu1 %916 }
 0xd73   :  { %v918_v5 = vrot.slane %v917_v34, 2 }
 0xd74   :  { %v911_v1 = vpop.permute.xlu0 %910 }
 0xd75   :  { %v913_v29 = vadd.f32 %v911_v1, %v904_v27 }
 0xd77   :  { %1777 = vtanh.f32 %v913_v29  ;;  %v936_v30 = vrot.slane %v913_v29, %v2142_v15 }
 0xd79   :  { %937 = vrot.lane.b32.xlu1 %v936_v30, %s1979_s1 }
 0xd81   :  { %v1778_v32 = vpop.eup %1777 }
 0xd82   :  { %921 = vrot.lane.b32.xlu0 %v1778_v32, %s1979_s1 }
 0xdeb   :  { %v938_v37 = vpop.permute.xlu1 %937 }
 0xdec   :  { %v940_v2 = vmul.f32 %v938_v37, %v828_v33 }
 0xdee   :  { %v942_v39 = vadd.f32 %v941_v38, %v940_v2 }
 0xdf0   :  { %v1018_v3 = vrot.slane %v942_v39, %v2142_v15  ;;  %v2271_v4 = vmul.f32 %v1043_v0, %v942_v39 }
 0xdf2   :  { %1019 = vrot.lane.b32.xlu0 %v1018_v3, %s1979_s1 }
 0xdf4   :  { %v922_v6 = vpop.permute.xlu0 %921 }
 0xdf5   :  { %v924_v40 = vmul.f32 %v922_v6, %v918_v5 }
 0xdf7   :  { %v2274_v8 = vmul.f32 %v924_v40, %v828_v33 }
 0xdf9   :  { %v928_v41 = vadd.f32 %v927_v7, %v2274_v8 }
 0xdfb   :  { %v947_v43 = vpack.c.bf16 %v928_v41, %v928_v41  ;;  %v1045_v21 = vmul.f32 %v1043_v0, %v928_v41 }
 0xdfd   :  { %1589 = vmatmul.mubr.msk.bf16.vlgmr.msra.gmra.mrb[12].mxu1 %vm133_vm0, %v947_v43 }
 0xdfe   :  { %1635 = vmatpush3.bf16.msra.mxu1 %v2281_v9  ;;  %1638 = vmatprep.mubr.msk.bf16.mxu1 %vm1988_vm1, %v1987_v12 }
 0xdff   :  { %1636 = vmatprep.subr.bf16.mxu1 %v1987_v12 }
 0xe02   :  { %1637 = vmatpush3.bf16.msra.mxu1 %v2292_v13 }
 0xe03   :  { %1650 = vmatprep.subr.bf16.mxu1 %v1987_v12 }
 0xe64   :  { %v1020_v60 = vpop.permute.xlu0 %1019 }
 0xed0   :  { %v985_v44 = vpop.f32.mrb[12].mxu1 }
 0xed1   :  { %v987_v45 = vpop.f32.mrb[13].mxu1 }
 0xed2   :  { %v994_v46 = vcombine.low %v985_v44, %v987_v45  ;;  %v989_v47 = vpop.f32.mrb[14].mxu1 }
 0xed3   :  { %v990_v50 = vpop.f32.mrb[15].mxu1 }
 0xed4   :  { %v1001_v51 = vrot.slane %v994_v46, %v2142_v15 }
 0xed6   :  { %v1003_v52 = vadd.f32 %v1001_v51, %v944_v49 }
 0xed8   :  { %v1590_v53 = vmul.f32 -1.442695, %v1003_v52 }
 0xeda   :  { %1779 = vpow2.f32 %v1590_v53 }
 0xedb   :  { %1781 = vtanh.f32 %v1003_v52 }
 0xee4   :  { %v1780_v54 = vpop.eup %1779 }
 0xee5   :  { %v1007_v55 = vadd.f32 1.0, %v1780_v54  ;;  %v1782_v56 = vpop.eup %1781 }
 0xee6   :  { %v1024_v57 = vrot.slane %v1782_v56, 2 }
 0xee7   :  { %1783 = vrcp.f32 %v1007_v55 }
 0xef1   :  { %v1784_v58 = vpop.eup %1783 }
 0xef2   :  { %1034 = vrot.lane.b32.xlu0 %v1784_v58, %s1979_s1  ;;  %v1026_v59 = vmul.f32 %v1784_v58, %v1024_v57  ;;  %v1022_v62 = vmul.f32 %v1784_v58, %v1020_v60 }
 0xef4   :  { %1028 = vrot.lane.b32.xlu1 %v1026_v59, %s1979_s1 }
 0xf64   :  { %v1035_v16 = vpop.permute.xlu0 %1034 }
 0xf65   :  { %v1036_v17 = vrot.slane %v1035_v16, 2 }
 0xf66   :  { %v1029_v63 = vpop.permute.xlu1 %1028 }
 0xf67   :  { %v2283_v11 = vadd.f32 %v1029_v63, %v1022_v62 }
 0xf69   :  { %1785 = vtanh.f32 %v2283_v11 }
 0xf73   :  { %v1786_v14 = vpop.eup %1785 }
 0xf74   :  { %1039 = vrot.lane.b32.xlu1 %v1786_v14, %s1979_s1 }
 0xf78   :  { %1135 = vrot.lane.b32.xlu1 %v2274_v8, %s1989_s3 }
 0xf7c   :  { %1233 = vrot.lane.b32.xlu1 %v2235_v31, %s1989_s3 }
 0xf80   :  { %1331 = vrot.lane.b32.xlu1 %v2194_v10, %s1989_s3 }
 0xf84   :  { %1429 = vrot.lane.b32.xlu1 %v2150_v42, %s1989_s3 }
 0xfe6   :  { %v1040_v18 = vpop.permute.xlu1 %1039 }
 0xfe7   :  { %v1042_v19 = vmul.f32 %v1040_v18, %v1036_v17 }
 0xfe9   :  { %v1044_v20 = vmul.f32 %v1042_v19, %v2265_v36 }
 0xfea   :  { %v1136_v22 = vpop.permute.xlu1 %1135 }
 0xfeb   :  { %v1138_v23 = vadd.f32 %v1136_v22, %v2173_v28  ;;  %1067 = vrot.lane.b32.xlu0 %v1044_v20, %s1989_s3  ;;  %v1046_v24 = vadd.f32 %v1045_v21, %v1044_v20 }
 0xfed   :  { %v1139_v25 = vpack.c.bf16 %v1138_v23, %v1138_v23  ;;  %1479 = vst.msk [vmem:[#allocation10 + $0x2] sm:$0x3] %vm1477_vm2, %v1138_v23  ;;  %1495 = vrot.lane.b32.xlu1 %v1046_v24, %s1989_s3 }
 0xfee   :  { %v1234_v26 = vpop.permute.xlu1 %1233 }
 0xfef   :  { %v1236_v27 = vadd.f32 %v1234_v26, %v2215_v48  ;;  %1639 = vmatmul.mubr.msk.bf16.vlgmr.msra.gmra.mrb[16].mxu1 %vm1090_vm3, %v1139_v25  ;;  %1184 = vrot.lane.b32.xlu0 %v2255_v61, %s1989_s3 }
 0xff0   :  { %1651 = vmatpush3.bf16.msra.mxu1 %v2281_v9  ;;  %1654 = vmatprep.mubr.msk.bf16.mxu1 %vm1988_vm1, %v1987_v12 }
 0xff1   :  { %1481 = vst.msk [vmem:[#allocation10 + $0x6] sm:$0x3] %vm1477_vm2, %v1236_v27  ;;  %1652 = vmatprep.subr.bf16.mxu1 %v1987_v12  ;;  %v1237_v30 = vpack.c.bf16 %v1236_v27, %v1236_v27 }
 0xff2   :  { %v1332_v1 = vpop.permute.xlu1 %1331 }
 0xff3   :  { %v1334_v29 = vadd.f32 %v1332_v1, %v2255_v61  ;;  %1282 = vrot.lane.b32.xlu0 %v2215_v48, %s1989_s3  ;;  %v1054_v48 = vrot.slane %v2283_v11, %v2142_v15 }
 0xff4   :  { %1653 = vmatpush3.bf16.msra.mxu1 %v2292_v13 }
 0xff5   :  { %1483 = vst.msk [vmem:[#allocation10 + $0xa] sm:$0x3] %vm1477_vm2, %v1334_v29  ;;  %1666 = vmatprep.subr.bf16.mxu1 %v1987_v12  ;;  %v1335_v61 = vpack.c.bf16 %v1334_v29, %v1334_v29 }
 0xff6   :  { %v1430_v32 = vpop.permute.xlu1 %1429 }
 0xff7   :  { %v1432_v33 = vadd.f32 %v1430_v32, %v1044_v20  ;;  %1655 = vmatmul.mubr.msk.bf16.vlgmr.msra.gmra.mrb[20].mxu1 %vm1090_vm3, %v1237_v30  ;;  %1380 = vrot.lane.b32.xlu0 %v2173_v28, %s1989_s3 }
 0xff8   :  { %1667 = vmatpush3.bf16.msra.mxu1 %v2281_v9  ;;  %1670 = vmatprep.mubr.msk.bf16.mxu1 %vm1988_vm1, %v1987_v12 }
 0xff9   :  { %1485 = vst.msk [vmem:[#allocation10 + $0xe] sm:$0x3] %vm1477_vm2, %v1432_v33  ;;  %1668 = vmatprep.subr.bf16.mxu1 %v1987_v12  ;;  %v1433_v28 = vpack.c.bf16 %v1432_v33, %v1432_v33 }
 0xffb   :  { %1055 = vrot.lane.b32.xlu0 %v1054_v48, %s1979_s1 }
 0xffc   :  { %1669 = vmatpush3.bf16.msra.mxu1 %v2292_v13 }
 0xffd   :  { %1682 = vmatprep.subr.bf16.mxu1 %v1987_v12 }
 0xfff   :  { %1671 = vmatmul.mubr.msk.bf16.vlgmr.msra.gmra.mrb[24].mxu1 %vm1090_vm3, %v1335_v61 }
0x1000   :  { %1683 = vmatpush3.bf16.msra.mxu1 %v2281_v9  ;;  %1686 = vmatprep.mubr.msk.bf16.mxu1 %vm1988_vm1, %v1987_v12 }
0x1001   :  { %1684 = vmatprep.subr.bf16.mxu1 %v1987_v12 }
0x1004   :  { %1685 = vmatpush3.bf16.msra.mxu1 %v2292_v13 }
0x1007   :  { %1687 = vmatmul.mubr.msk.bf16.vlgmr.msra.gmra.mrb[28].mxu1 %vm1090_vm3, %v1433_v28 }
0x105d   :  { %v1068_v15 = vpop.permute.xlu0 %1067 }
0x105e   :  { %v1070_v34 = vadd.f32 %v1068_v15, %v2150_v42 }
0x105f   :  { %v1496_v35 = vpop.permute.xlu1 %1495 }
0x1060   :  { %v1071_v37 = vpack.c.bf16 %v1070_v34, %v1070_v34  ;;  %1478 = vst.msk [vmem:[#allocation10] sm:$0x3] %vm1477_vm2, %v1070_v34  ;;  %v1498_v38 = vadd.f32 %v1496_v35, %v1046_v24 }
0x1061   :  { %v1185_v2 = vpop.permute.xlu0 %1184 }
0x1062   :  { %1499 = vst.msk [vmem:[#allocation13] sm:$0x3] %vm1477_vm2, %v1498_v38  ;;  %v1187_v0 = vadd.f32 %v1185_v2, %v2194_v10  ;;  %1631 = vmatmul.mubr.msk.bf16.vlgmr.msra.gmra.mrb[16].mxu0 %vm1090_vm3, %v1071_v37 }
0x1063   :  { %1643 = vmatpush3.bf16.msra.mxu0 %v2281_v9  ;;  %1646 = vmatprep.mubr.msk.bf16.mxu0 %vm1988_vm1, %v1987_v12 }
0x1064   :  { %1480 = vst.msk [vmem:[#allocation10 + $0x4] sm:$0x3] %vm1477_vm2, %v1187_v0  ;;  %1644 = vmatprep.subr.bf16.mxu0 %v1987_v12  ;;  %v1188_v3 = vpack.c.bf16 %v1187_v0, %v1187_v0 }
0x1065   :  { %v1283_v42 = vpop.permute.xlu0 %1282 }
0x1066   :  { %v1285_v39 = vadd.f32 %v1283_v42, %v2235_v31 }
0x1067   :  { %1645 = vmatpush3.bf16.msra.mxu0 %v2292_v13 }
0x1068   :  { %1482 = vst.msk [vmem:[#allocation10 + $0x8] sm:$0x3] %vm1477_vm2, %v1285_v39  ;;  %1658 = vmatprep.subr.bf16.mxu0 %v1987_v12  ;;  %v1286_v40 = vpack.c.bf16 %v1285_v39, %v1285_v39 }
0x1069   :  { %v1381_v10 = vpop.permute.xlu0 %1380 }
0x106a   :  { %v1383_v5 = vadd.f32 %v1381_v10, %v2274_v8  ;;  %1647 = vmatmul.mubr.msk.bf16.vlgmr.msra.gmra.mrb[20].mxu0 %vm1090_vm3, %v1188_v3 }
0x106b   :  { %1659 = vmatpush3.bf16.msra.mxu0 %v2281_v9  ;;  %1662 = vmatprep.mubr.msk.bf16.mxu0 %vm1988_vm1, %v1987_v12 }
0x106c   :  { %1484 = vst.msk [vmem:[#allocation10 + $0xc] sm:$0x3] %vm1477_vm2, %v1383_v5  ;;  %1660 = vmatprep.subr.bf16.mxu0 %v1987_v12 }
0x106d   :  { %v1056_v31 = vpop.permute.xlu0 %1055 }
0x106e   :  { %v1058_v6 = vmul.f32 %v1056_v31, %v2265_v36  ;;  %v1384_v36 = vpack.c.bf16 %v1383_v5, %v1383_v5 }
0x106f   :  { %1661 = vmatpush3.bf16.msra.mxu0 %v2292_v13 }
0x1070   :  { %v1060_v7 = vadd.f32 %v2271_v4, %v1058_v6  ;;  %1674 = vmatprep.subr.bf16.mxu0 %v1987_v12  ;;  %v2389_v4 = vld [vmem:[%s2466_s4] ss:$0 sm:$0xff]  ;;  %s1875_s4 = scalar_lea.vmem %s1512_s18, 256 }
0x1071   :  { %p1876_p4 = scmp.ne.s32.totalorder %s1512_s18, %s1875_s4  ;;  %p1881_p6 = scmp.lt.s32.totalorder %s1875_s4, %s1875_s4 }
0x1072   :  { %1663 = vmatmul.mubr.msk.bf16.vlgmr.msra.gmra.mrb[24].mxu0 %vm1090_vm3, %v1286_v40  ;;  %1501 = vrot.lane.b32.xlu0 %v1060_v7, %s1989_s3 }
0x1073   :  { %1675 = vmatpush3.bf16.msra.mxu0 %v2281_v9  ;;  %1678 = vmatprep.mubr.msk.bf16.mxu0 %vm1988_vm1, %v1987_v12  ;;  %p1882_p7 = por %p1881_p6, %p1880_p5 }
0x1074   :  { %1676 = vmatprep.subr.bf16.mxu0 %v1987_v12 }
0x1075   :  { %p1883_p8 = pnand %p1882_p7, %p1876_p4 }
0x1077   :  { %1677 = vmatpush3.bf16.msra.mxu0 %v2292_v13 }
0x107a   :  { %1679 = vmatmul.mubr.msk.bf16.vlgmr.msra.gmra.mrb[28].mxu0 %vm1090_vm3, %v1384_v36 }
0x10c2   :  { %v1177_v8 = vpop.f32.mrb[16].mxu1 }
0x10c3   :  { %v1178_v41 = vadd.f32 %v2389_v4, %v1177_v8  ;;  %v1640_v43 = vpop.f32.mrb[17].mxu1 }
0x10c4   :  { %v1180_v44 = vpop.f32.mrb[18].mxu1 }
0x10c5   :  { %1487 = vst.msk [vmem:[#allocation11 + $0x2] sm:$0x3] %vm1477_vm2, %v1178_v41  ;;  %v1641_v45 = vpop.f32.mrb[19].mxu1 }
0x10ca   :  { %v1275_v46 = vpop.f32.mrb[20].mxu1 }
0x10cb   :  { %v1276_v47 = vadd.f32 %v2389_v4, %v1275_v46  ;;  %v1656_v49 = vpop.f32.mrb[21].mxu1 }
0x10cc   :  { %v1278_v50 = vpop.f32.mrb[22].mxu1 }
0x10cd   :  { %1489 = vst.msk [vmem:[#allocation11 + $0x6] sm:$0x3] %vm1477_vm2, %v1276_v47  ;;  %v1657_v51 = vpop.f32.mrb[23].mxu1 }
0x10d2   :  { %v1373_v52 = vpop.f32.mrb[24].mxu1 }
0x10d3   :  { %1886 = shalt.err (!%p1883_p8)
}
0x10d4   :  { %s1887_s22 = scalar_lea.hbm %s2467_s5, 256 }
0x10d5   :  { %p1888_p9 = scmp.ne.s32.totalorder %s2467_s5, %s1887_s22  ;;  %p1891_p10 = scmp.lt.u32.totalorder %s1887_s22, %s2467_s5 }
0x10d7   :  { %p1893_p11 = pnand %p1891_p10, %p1888_p9 }
0x10d9   :  { %1896 = shalt.err (!%p1893_p11)
}
0x10da   :  { %1517 = dma.vmem_to_hbm [thread:$0]  %s1512_s18, 256, %s2467_s5, [#allocation4], %s1976_s15, %s1976_s15, %s1977_s16   ;;  %v1374_v53 = vadd.f32 %v2389_v4, %v1373_v52  ;;  %v1672_v54 = vpop.f32.mrb[25].mxu1 }
0x10db   :  { %v1376_v55 = vpop.f32.mrb[26].mxu1  ;;  %s1991_s27 = smov [#allocation14]  }
0x10dc   :  { %1491 = vst.msk [vmem:[#allocation11 + $0xa] sm:$0x3] %vm1477_vm2, %v1374_v53  ;;  %v1673_v56 = vpop.f32.mrb[27].mxu1  ;;  %s1546_s29 = sshll.u32 %s1991_s27, 4  ;;  %s1547_s29 = int_to_ptr.vmem [resolvable:$true] %s1546_s29 }
0x10dd   :  { %v1471_v57 = vpop.f32.mrb[28].mxu1  ;;  %s1897_s5 = scalar_lea.vmem %s1547_s29, 32  ;;  %p1902_p13 = scmp.lt.s32.totalorder %s1547_s29, %s1547_s29 }
0x10de   :  { %v1472_v58 = vadd.f32 %v2389_v4, %v1471_v57  ;;  %v1688_v59 = vpop.f32.mrb[29].mxu1  ;;  %p1898_p12 = scmp.ne.s32.totalorder %s1547_s29, %s1897_s5  ;;  %p1903_p0 = scmp.lt.s32.totalorder %s1897_s5, %s1897_s5 }
0x10df   :  { %v1474_v60 = vpop.f32.mrb[30].mxu1 }
0x10e0   :  { %1493 = vst.msk [vmem:[#allocation11 + $0xe] sm:$0x3] %vm1477_vm2, %v1472_v58  ;;  %v1689_v62 = vpop.f32.mrb[31].mxu1  ;;  %p1904_p1 = por %p1903_p0, %p1902_p13 }
0x10e2   :  { %p1905_p2 = pnand %p1904_p1, %p1898_p12 }
0x10e4   :  { %v1502_v63 = vpop.permute.xlu0 %1501 }
0x10e5   :  { %v1504_v9 = vadd.f32 %v1502_v63, %v1060_v7 }
0x10e7   :  { %1505 = vst.msk [vmem:[#allocation14] sm:$0x3] %vm1477_vm2, %v1504_v9 }
0x10e8   :  { %1908 = shalt.err (!%p1905_p2)
}
0x10e9   :  { %s1909_s10 = scalar_lea.hbm %s2470_s8, 32 }
0x10ea   :  { %p1910_p3 = scmp.ne.s32.totalorder %s2470_s8, %s1909_s10  ;;  %p1913_p4 = scmp.lt.u32.totalorder %s1909_s10, %s2470_s8 }
0x10ec   :  { %p1915_p5 = pnand %p1913_p4, %p1910_p3 }
0x10ee   :  { %1918 = shalt.err (!%p1915_p5)
}
0x10ef   :  { %1549 = dma.vmem_to_hbm [thread:$0]  %s1547_s29, 32, %s2470_s8, [#allocation15]  }
0x10f0   :  { %s1992_s8 = smov [#allocation11]   ;;  %s1993_s28 = smov [#allocation13]  }
0x10f1   :  { %s1523_s1 = sshll.u32 %s1992_s8, 4  ;;  %s1536_s17 = sshll.u32 %s1993_s28, 4  ;;  %s1524_s1 = int_to_ptr.vmem [resolvable:$true] %s1523_s1  ;;  %s1537_s17 = int_to_ptr.vmem [resolvable:$true] %s1536_s17 }
0x10f2   :  { %s1919_s18 = scalar_lea.vmem %s1524_s1, 256  ;;  %p1924_p7 = scmp.lt.s32.totalorder %s1524_s1, %s1524_s1 }
0x10f3   :  { %p1920_p6 = scmp.ne.s32.totalorder %s1524_s1, %s1919_s18  ;;  %p1925_p8 = scmp.lt.s32.totalorder %s1919_s18, %s1919_s18 }
0x10f5   :  { %p1926_p9 = por %p1925_p8, %p1924_p7 }
0x10f7   :  { %p1927_p10 = pnand %p1926_p9, %p1920_p6 }
0x1135   :  { %v1128_v11 = vpop.f32.mrb[16].mxu0 }
0x1136   :  { %v1129_v12 = vadd.f32 %v2389_v4, %v1128_v11  ;;  %v1632_v13 = vpop.f32.mrb[17].mxu0 }
0x1137   :  { %v1131_v14 = vpop.f32.mrb[18].mxu0 }
0x1138   :  { %1486 = vst.msk [vmem:[#allocation11] sm:$0x3] %vm1477_vm2, %v1129_v12  ;;  %v1633_v16 = vpop.f32.mrb[19].mxu0 }
0x113d   :  { %v1226_v17 = vpop.f32.mrb[20].mxu0 }
0x113e   :  { %v1227_v18 = vadd.f32 %v2389_v4, %v1226_v17  ;;  %v1648_v19 = vpop.f32.mrb[21].mxu0 }
0x113f   :  { %v1229_v20 = vpop.f32.mrb[22].mxu0 }
0x1140   :  { %1488 = vst.msk [vmem:[#allocation11 + $0x4] sm:$0x3] %vm1477_vm2, %v1227_v18  ;;  %v1649_v21 = vpop.f32.mrb[23].mxu0 }
0x1145   :  { %v1324_v22 = vpop.f32.mrb[24].mxu0 }
0x1146   :  { %v1325_v23 = vadd.f32 %v2389_v4, %v1324_v22  ;;  %v1664_v24 = vpop.f32.mrb[25].mxu0 }
0x1147   :  { %v1327_v25 = vpop.f32.mrb[26].mxu0 }
0x1148   :  { %1490 = vst.msk [vmem:[#allocation11 + $0x8] sm:$0x3] %vm1477_vm2, %v1325_v23  ;;  %v1665_v26 = vpop.f32.mrb[27].mxu0 }
0x114d   :  { %v1422_v27 = vpop.f32.mrb[28].mxu0 }
0x114e   :  { %v1423_v1 = vadd.f32 %v2389_v4, %v1422_v27  ;;  %v1680_v29 = vpop.f32.mrb[29].mxu0 }
0x114f   :  { %v1425_v30 = vpop.f32.mrb[30].mxu0 }
0x1150   :  { %1492 = vst.msk [vmem:[#allocation11 + $0xc] sm:$0x3] %vm1477_vm2, %v1423_v1  ;;  %v1681_v32 = vpop.f32.mrb[31].mxu0 }
0x1151   :  { %1930 = shalt.err (!%p1927_p10)
}
0x1152   :  { %s1931_s21 = scalar_lea.hbm %s2468_s6, 256 }
0x1153   :  { %p1932_p11 = scmp.ne.s32.totalorder %s2468_s6, %s1931_s21  ;;  %p1935_p12 = scmp.lt.u32.totalorder %s1931_s21, %s2468_s6 }
0x1155   :  { %p1937_p13 = pnand %p1935_p12, %p1932_p11 }
0x1157   :  { %1940 = shalt.err (!%p1937_p13)
}
0x1158   :  { %1529 = dma.vmem_to_hbm [thread:$0]  %s1524_s1, 256, %s2468_s6, [#allocation12], %s1976_s15, %s1976_s15, %s1977_s16  }
0x1159   :  { %s1941_s26 = scalar_lea.vmem %s1537_s17, 32  ;;  %p1946_p1 = scmp.lt.s32.totalorder %s1537_s17, %s1537_s17 }
0x115a   :  { %p1942_p0 = scmp.ne.s32.totalorder %s1537_s17, %s1941_s26  ;;  %p1947_p2 = scmp.lt.s32.totalorder %s1941_s26, %s1941_s26 }
0x115c   :  { %p1948_p3 = por %p1947_p2, %p1946_p1 }
0x115e   :  { %p1949_p4 = pnand %p1948_p3, %p1942_p0 }
0x1160   :  { %1952 = shalt.err (!%p1949_p4)
}
0x1161   :  { %s1953_s5 = scalar_lea.hbm %s2469_s7, 32 }
0x1162   :  { %p1954_p5 = scmp.ne.s32.totalorder %s2469_s7, %s1953_s5  ;;  %p1957_p6 = scmp.lt.u32.totalorder %s1953_s5, %s2469_s7 }
0x1164   :  { %p1959_p7 = pnand %p1957_p6, %p1954_p5 }
0x1166   :  { %1962 = shalt.err (!%p1959_p7)
}
0x1167   :  { %1539 = dma.vmem_to_hbm [thread:$0]  %s1537_s17, 32, %s2469_s7, [#allocation12]  }
0x1168   :  { %1969 = dma.done.wait [#allocation4], 256  }
0x1169   :  { %1970 = vsyncadd [#allocation4], 4294967040 }
0x116a   :  { %1971 = dma.done.wait [#allocation12], 288  }
0x116b   :  { %1972 = vsyncadd [#allocation12], 4294967008 }
0x116c   :  { %1973 = dma.done.wait [#allocation15], 32  }
0x116d   :  { %1974 = vsyncadd [#allocation15], 4294967264 }
0x116e   :  { %1562 = vsyncpa [#allocation3], 1 }
0x116f   :  { %1563 = vsyncpa [#allocation6], 1 }
0x1170   :  { %1564 = vsyncpa [#allocation9], 1 }
0x1171   :  { %1565 = vsyncpa [#allocation4], 1 }
0x1172   :  { %1566 = vsyncpa [#allocation12], 1 }
0x1173   :  { %1567 = vsyncpa [#allocation15], 1 }

</bundles_post_ra>
